<compile_context>
chip_gen: v7x
topology: tpu7x:2x2x1
jax: 0.10.0
libtpu: 0.0.40
codegen_flags: <defaults>
</compile_context>

<pallas_src>
import math
import functools

import jax
import jax.numpy as jnp
from jax.experimental import pallas as pl
from jax.experimental.pallas import tpu as pltpu


# ----------------------------- kernel ------------------------------------- #
def _encoder_layer_kernel(x_ref, mask_ref, wqkv_ref, wo_ref, w1_ref, w2_ref,
                          pslab_ref, o_ref, *, seq_len, num_heads):
    R, D = x_ref.shape                     # R = bb * S rows in this grid step
    S, H = seq_len, num_heads
    bb = R // S
    d_k = D // H
    F = w1_ref.shape[1]

    x = x_ref[...]                         # (R, D) f32

    # One resident f32 parameter slab (single DMA stream):
    # rows = [g1, be1, g2, be2, bo, b2, bqkv(3D), b1(F)], lane-padded to W.
    slab = pslab_ref[...]
    g1, be1 = slab[0:1, :D], slab[1:2, :D]
    g2, be2 = slab[2:3, :D], slab[3:4, :D]
    bo, b2 = slab[4:5, :D], slab[5:6, :D]
    bqkv = slab[6:7, :3 * D]
    b1 = slab[7:8, :F]

    def layernorm(h, gamma, beta):         # f32 math, eps matches torch (1e-6)
        mu = jnp.mean(h, axis=-1, keepdims=True)
        var = jnp.mean((h - mu) ** 2, axis=-1, keepdims=True)
        return (h - mu) * jax.lax.rsqrt(var + 1e-6) * gamma + beta

    # ---- sublayer 0: pre-LN multi-head self-attention ---------------------- #
    h = layernorm(x, g1, be1)

    # Fused QKV projection: one (R, D) @ (D, 3D) bf16 MXU matmul, f32 acc.
    # The 1/sqrt(d_k) attention scale is folded into the Q columns at pack time.
    qkv = jnp.dot(h.astype(jnp.bfloat16), wqkv_ref[...],
                  preferred_element_type=jnp.float32) + bqkv       # (R, 3D) f32
    qkv_bf = qkv.astype(jnp.bfloat16)

    def split_heads(t):                    # (S, D) -> (H, S, d_k)
        return jnp.stack(
            [t[:, i * d_k:(i + 1) * d_k] for i in range(H)], axis=0)

    # Attention per batch element (static trace-time loop, bb is small):
    # no cross-batch score work, no block-diagonal bias, score VMEM = O(H*S^2).
    merged_rows = []
    for b in range(bb):
        rows = slice(b * S, (b + 1) * S)
        qh = split_heads(qkv_bf[rows, 0:D])
        kh = split_heads(qkv_bf[rows, D:2 * D])
        vh = split_heads(qkv_bf[rows, 2 * D:3 * D])

        # scores[h, q, k] with f32 accumulation          -> (H, S, S)
        scores = jax.lax.dot_general(
            qh, kh, (((2,), (2,)), ((0,), (0,))),
            preferred_element_type=jnp.float32)
        scores = scores + mask_ref[b] * (-1e9)           # key-padding bias (1, S)

        # softmax in f32; denominator reciprocal on the EUP slot.
        m = jnp.max(scores, axis=-1, keepdims=True)
        e = jnp.exp(scores - m)
        p = e * pl.reciprocal(jnp.sum(e, axis=-1, keepdims=True), approx=True)

        ah = jax.lax.dot_general(
            p.astype(jnp.bfloat16), vh, (((2,), (1,)), ((0,), (0,))),
            preferred_element_type=jnp.float32)          # (H, S, d_k)

        # Merge heads once: (H, S, d_k) -> (S, D).
        merged_rows.append(jnp.concatenate([ah[i] for i in range(H)], axis=-1))

    merged = merged_rows[0] if bb == 1 else jnp.concatenate(merged_rows, axis=0)

    # Single (R, D) @ (D, D) output projection (full contraction depth D).
    attn = jnp.dot(merged.astype(jnp.bfloat16), wo_ref[...],
                   preferred_element_type=jnp.float32) + bo        # (R, D)

    x1 = x + attn                          # dropout = identity (eval mode)

    # ---- sublayer 1: position-wise feed-forward ---------------------------- #
    h2 = layernorm(x1, g2, be2)
    f = jnp.dot(h2.astype(jnp.bfloat16), w1_ref[...],
                preferred_element_type=jnp.float32) + b1           # (R, F)
    f = jnp.maximum(f, 0.0)
    f = jnp.dot(f.astype(jnp.bfloat16), w2_ref[...],
                preferred_element_type=jnp.float32) + b2           # (R, D)

    o_ref[...] = x1 + f


# ----------------------------- grid heuristics ----------------------------- #
def _step_vmem_bytes(bb, S, D, F, H):
    """Rough per-grid-step VMEM footprint (bytes)."""
    R = bb * S
    return (4 * 2 * 2 * R * D                         # x + out slabs, double-buffered f32
            + 2 * (3 * D * D + D * D + 2 * D * F)     # bf16 weights (one copy)
            + 4 * 8 * max(3 * D, F)                   # f32 parameter slab
            + 4 * (4 * R * D + 2 * H * S * S + 2 * R * F))  # live f32 activations


def _choose_grid_steps(B, S, D, F, H, budget=40 * 1024 * 1024):
    """Pick GB (number of grid steps, divides B).  Prefer >= 4 even steps
    (both v7x TCs + DMA pipelining), then >= 2 even steps (both TCs busy at
    B == 2), always bounded by a conservative VMEM budget (v7x: 64 MiB)."""
    divs = [g for g in range(1, B + 1) if B % g == 0]

    def fits(g):
        bb = B // g
        return (_step_vmem_bytes(bb, S, D, F, H) <= budget
                and (g == 1 or (bb * S) % 8 == 0))    # (8,128) block rule

    for pred in (lambda g: g % 2 == 0 and g >= 4 and fits(g),
                 lambda g: g % 2 == 0 and fits(g),
                 fits):
        cands = [g for g in divs if pred(g)]
        if cands:
            return min(cands)                         # largest per-step slab
    return B


# ----------------------------- wrapper ------------------------------------- #
def encoder_layer(x, mask, params, *, num_heads):
    B, S, D = x.shape
    H = num_heads
    d_k = D // H
    F = params["w1"].shape[1]

    GB = _choose_grid_steps(B, S, D, F, H)
    bb = B // GB
    R = bb * S

    # --- pack-time parameter prep (pure layout / static math, no per-token cost) ---
    scale = 1.0 / math.sqrt(d_k)                                  # fold into Q
    wqkv = jnp.concatenate(
        [params["wq"] * scale, params["wk"], params["wv"]], axis=1
    ).astype(jnp.bfloat16)                                        # (D, 3D) bf16
    bqkv = jnp.concatenate(
        [params["bq"] * scale, params["bk"], params["bv"]], axis=1)  # (1, 3D) f32
    wo = params["wo"].astype(jnp.bfloat16)
    w1 = params["w1"].astype(jnp.bfloat16)
    w2 = params["w2"].astype(jnp.bfloat16)

    W = max(3 * D, F)

    def row(v):
        return jnp.pad(v, ((0, 0), (0, W - v.shape[1])))

    pslab = jnp.concatenate(
        [row(params["g1"]), row(params["be1"]),
         row(params["g2"]), row(params["be2"]),
         row(params["bo"]), row(params["b2"]),
         row(bqkv), row(params["b1"])], axis=0)                   # (8, W) f32

    x2 = x.reshape(B * S, D)

    # Explicit scoped-VMEM limit (v7x default is 32 MiB, physical 64 MiB).
    vmem_limit = int(min(64 * 1024 * 1024,
                         max(32 * 1024 * 1024,
                             2 * _step_vmem_bytes(bb, S, D, F, H))))

    kernel = functools.partial(_encoder_layer_kernel, seq_len=S, num_heads=H)

    def run(single_buffer_weights):
        wkw = ({"pipeline_mode": pl.Buffered(1)}
               if single_buffer_weights else {})
        grid_spec = pltpu.PrefetchScalarGridSpec(
            num_scalar_prefetch=0,
            grid=(GB,),
            in_specs=[
                pl.BlockSpec((R, D), lambda i: (i, 0)),            # x rows
                pl.BlockSpec((bb, 1, S), lambda i: (i, 0, 0)),     # padding mask
                pl.BlockSpec((D, 3 * D), lambda i: (0, 0), **wkw),  # fused wqkv
                pl.BlockSpec((D, D), lambda i: (0, 0), **wkw),      # wo
                pl.BlockSpec((D, F), lambda i: (0, 0), **wkw),      # w1
                pl.BlockSpec((F, D), lambda i: (0, 0), **wkw),      # w2
                pl.BlockSpec((8, W), lambda i: (0, 0), **wkw),      # param slab
            ],
            out_specs=pl.BlockSpec((R, D), lambda i: (i, 0)),
        )
        out = pl.pallas_call(
            kernel,
            out_shape=jax.ShapeDtypeStruct((B * S, D), jnp.float32),
            grid_spec=grid_spec,
            compiler_params=pltpu.CompilerParams(
                dimension_semantics=("parallel",),
                vmem_limit_bytes=vmem_limit),
        )(x2, mask, wqkv, wo, w1, w2, pslab)
        return jax.block_until_ready(out)

    try:
        out = run(True)
    except Exception:
        # Fallback for jax versions without BlockSpec pipeline_mode /
        # Buffered(1); weights then simply stay default double-buffered.
        out = run(False)

    return out.reshape(B, S, D)


# ------------------------- pure-JAX reference ------------------------------ #
def encoder_layer_ref(x, mask, p, *, num_heads):
    B, S, D = x.shape
    d_k = D // num_heads

    def ln(h, g, b):
        mu = jnp.mean(h, axis=-1, keepdims=True)
        var = jnp.mean((h - mu) ** 2, axis=-1, keepdims=True)
        return (h - mu) / jnp.sqrt(var + 1e-6) * g + b

    h = ln(x, p["g1"], p["be1"])
    q = h @ p["wq"] + p["bq"]
    k = h @ p["wk"] + p["bk"]
    v = h @ p["wv"] + p["bv"]
    q = q.reshape(B, S, num_heads, d_k).transpose(0, 2, 1, 3)
    k = k.reshape(B, S, num_heads, d_k).transpose(0, 2, 1, 3)
    v = v.reshape(B, S, num_heads, d_k).transpose(0, 2, 1, 3)
    scores = jnp.einsum("bhqd,bhkd->bhqk", q, k) / math.sqrt(d_k)
    scores = scores + mask[:, :, None, :] * (-1e9)   # (B,1,1,S) broadcast
    pa = jax.nn.softmax(scores, axis=-1)
    a = jnp.einsum("bhqk,bhkd->bhqd", pa, v)
    a = a.transpose(0, 2, 1, 3).reshape(B, S, D)
    x1 = x + (a @ p["wo"] + p["bo"])
    h2 = ln(x1, p["g2"], p["be2"])
    f = jnp.maximum(h2 @ p["w1"] + p["b1"], 0.0) @ p["w2"] + p["b2"]
    return x1 + f


# ------------------------------- main -------------------------------------- #
if __name__ == "__main__":
    B, S, D, H, FF = 2, 8, 32, 4, 64

    key = jax.random.PRNGKey(0)
    keys = jax.random.split(key, 16)

    def w(k, shape, scale=0.1):
        return jax.random.normal(k, shape, dtype=jnp.float32) * scale

    params = {
        "wq": w(keys[0], (D, D)), "bq": w(keys[1], (1, D)),
        "wk": w(keys[2], (D, D)), "bk": w(keys[3], (1, D)),
        "wv": w(keys[4], (D, D)), "bv": w(keys[5], (1, D)),
        "wo": w(keys[6], (D, D)), "bo": w(keys[7], (1, D)),
        "g1": jnp.ones((1, D), jnp.float32), "be1": jnp.zeros((1, D), jnp.float32),
        "g2": jnp.ones((1, D), jnp.float32), "be2": jnp.zeros((1, D), jnp.float32),
        "w1": w(keys[8], (D, FF)), "b1": w(keys[9], (1, FF)),
        "w2": w(keys[10], (FF, D)), "b2": w(keys[11], (1, D)),
    }

    x = jax.random.normal(keys[12], (B, S, D), dtype=jnp.float32)
    # padding mask: 1.0 = padded key position, 0.0 = valid
    mask = (jax.random.uniform(keys[13], (B, 1, S)) < 0.25).astype(jnp.float32)

    out = encoder_layer(x, mask, params, num_heads=H)
    out = jax.block_until_ready(out)

    ref = encoder_layer_ref(x, mask, params, num_heads=H)
    assert out.shape == (B, S, D)
    # Tolerance accounts for bf16 MXU operands (f32 accumulation) and the EUP
    # approximate reciprocal in the softmax denominator; structural errors
    # (mask / LN / residual / head wiring) would be orders of magnitude larger.
    err = float(jnp.max(jnp.abs(out - ref)))
    assert jnp.allclose(out, ref, atol=3e-2, rtol=3e-2), f"mismatch vs reference (max abs err {err})"

    print("KERNEL_OK")
</pallas_src>

<mosaic_0001>
module attributes {stable_mosaic.version = 11 : i64} {
  func.func @_encoder_layer_kernel(%arg0: i32, %arg1: memref<8x32xf32, #tpu.memory_space<vmem>>, %arg2: memref<1x1x8xf32, #tpu.memory_space<vmem>>, %arg3: memref<32x96xbf16, #tpu.memory_space<vmem>>, %arg4: memref<32x32xbf16, #tpu.memory_space<vmem>>, %arg5: memref<32x64xbf16, #tpu.memory_space<vmem>>, %arg6: memref<64x32xbf16, #tpu.memory_space<vmem>>, %arg7: memref<8x96xf32, #tpu.memory_space<vmem>>, %arg8: memref<8x32xf32, #tpu.memory_space<vmem>>) attributes {dimension_semantics = [#tpu.dimension_semantics<parallel>], iteration_bounds = array<i64: 2>, scalar_prefetch = 0 : i64, scratch_operands = 0 : i64, tpu.core_type = #tpu.core_type<tc>, window_params = [{transform_indices = @transform_0, window_bounds = array<i64: 8, 32>}, {transform_indices = @transform_1, window_bounds = array<i64: 1, 1, 8>}, {pipeline_mode = #tpu.pipeline_mode<synchronous>, transform_indices = @transform_2, window_bounds = array<i64: 32, 96>}, {pipeline_mode = #tpu.pipeline_mode<synchronous>, transform_indices = @transform_3, window_bounds = array<i64: 32, 32>}, {pipeline_mode = #tpu.pipeline_mode<synchronous>, transform_indices = @transform_4, window_bounds = array<i64: 32, 64>}, {pipeline_mode = #tpu.pipeline_mode<synchronous>, transform_indices = @transform_5, window_bounds = array<i64: 64, 32>}, {pipeline_mode = #tpu.pipeline_mode<synchronous>, transform_indices = @transform_6, window_bounds = array<i64: 8, 96>}, {transform_indices = @transform_7, window_bounds = array<i64: 8, 32>}]} {
    %c0 = arith.constant 0 : index
    %c0_0 = arith.constant 0 : index
    %0 = vector.load %arg1[%c0, %c0_0] : memref<8x32xf32, #tpu.memory_space<vmem>>, vector<8x32xf32>
    %c0_1 = arith.constant 0 : index
    %c0_2 = arith.constant 0 : index
    %1 = vector.load %arg7[%c0_1, %c0_2] : memref<8x96xf32, #tpu.memory_space<vmem>>, vector<8x96xf32>
    %2 = vector.extract_strided_slice %1 {offsets = [0, 0], sizes = [1, 32], strides = [1, 1]} : vector<8x96xf32> to vector<1x32xf32>
    %3 = vector.extract_strided_slice %1 {offsets = [1, 0], sizes = [1, 32], strides = [1, 1]} : vector<8x96xf32> to vector<1x32xf32>
    %4 = vector.extract_strided_slice %1 {offsets = [2, 0], sizes = [1, 32], strides = [1, 1]} : vector<8x96xf32> to vector<1x32xf32>
    %5 = vector.extract_strided_slice %1 {offsets = [3, 0], sizes = [1, 32], strides = [1, 1]} : vector<8x96xf32> to vector<1x32xf32>
    %6 = vector.extract_strided_slice %1 {offsets = [4, 0], sizes = [1, 32], strides = [1, 1]} : vector<8x96xf32> to vector<1x32xf32>
    %7 = vector.extract_strided_slice %1 {offsets = [5, 0], sizes = [1, 32], strides = [1, 1]} : vector<8x96xf32> to vector<1x32xf32>
    %8 = vector.extract_strided_slice %1 {offsets = [6, 0], sizes = [1, 96], strides = [1, 1]} : vector<8x96xf32> to vector<1x96xf32>
    %9 = vector.extract_strided_slice %1 {offsets = [7, 0], sizes = [1, 64], strides = [1, 1]} : vector<8x96xf32> to vector<1x64xf32>
    %cst = arith.constant dense<0.000000e+00> : vector<8xf32>
    %10 = vector.multi_reduction <add>, %0, %cst [1] : vector<8x32xf32> to vector<8xf32>
    %11 = vector.shape_cast %10 : vector<8xf32> to vector<8x1xf32>
    %cst_3 = arith.constant 3.200000e+01 : f32
    %12 = vector.broadcast %cst_3 : f32 to vector<8x1xf32>
    %13 = arith.divf %11, %12 : vector<8x1xf32>
    %14 = vector.broadcast %13 : vector<8x1xf32> to vector<8x32xf32>
    %15 = arith.subf %0, %14 : vector<8x32xf32>
    %16 = arith.mulf %15, %15 : vector<8x32xf32>
    %cst_4 = arith.constant dense<0.000000e+00> : vector<8xf32>
    %17 = vector.multi_reduction <add>, %16, %cst_4 [1] : vector<8x32xf32> to vector<8xf32>
    %18 = vector.shape_cast %17 : vector<8xf32> to vector<8x1xf32>
    %cst_5 = arith.constant 3.200000e+01 : f32
    %19 = vector.broadcast %cst_5 : f32 to vector<8x1xf32>
    %20 = arith.divf %18, %19 : vector<8x1xf32>
    %21 = vector.broadcast %13 : vector<8x1xf32> to vector<8x32xf32>
    %22 = arith.subf %0, %21 : vector<8x32xf32>
    %cst_6 = arith.constant 9.99999997E-7 : f32
    %23 = vector.broadcast %cst_6 : f32 to vector<8x1xf32>
    %24 = arith.addf %20, %23 : vector<8x1xf32>
    %25 = math.rsqrt %24 : vector<8x1xf32>
    %26 = vector.broadcast %25 : vector<8x1xf32> to vector<8x32xf32>
    %27 = arith.mulf %22, %26 : vector<8x32xf32>
    %28 = vector.broadcast %2 : vector<1x32xf32> to vector<8x32xf32>
    %29 = arith.mulf %27, %28 : vector<8x32xf32>
    %30 = vector.broadcast %3 : vector<1x32xf32> to vector<8x32xf32>
    %31 = arith.addf %29, %30 : vector<8x32xf32>
    %32 = arith.truncf %31 : vector<8x32xf32> to vector<8x32xbf16>
    %c0_7 = arith.constant 0 : index
    %c0_8 = arith.constant 0 : index
    %33 = vector.load %arg3[%c0_7, %c0_8] : memref<32x96xbf16, #tpu.memory_space<vmem>>, vector<32x96xbf16>
    %cst_9 = arith.constant dense<0.000000e+00> : vector<8x96xf32>
    %34 = tpu.matmul %32, %33, %cst_9 {dimension_numbers = #tpu.dot_dimension_numbers<[1], [0], [0], [1], [0, 0, 1, 1], [], []>} : vector<8x32xbf16>, vector<32x96xbf16>, vector<8x96xf32> -> vector<8x96xf32>
    %35 = vector.broadcast %8 : vector<1x96xf32> to vector<8x96xf32>
    %36 = arith.addf %34, %35 : vector<8x96xf32>
    %37 = arith.truncf %36 : vector<8x96xf32> to vector<8x96xbf16>
    %38 = vector.extract_strided_slice %37 {offsets = [0, 0], sizes = [8, 32], strides = [1, 1]} : vector<8x96xbf16> to vector<8x32xbf16>
    %39 = vector.extract_strided_slice %38 {offsets = [0, 0], sizes = [8, 8], strides = [1, 1]} : vector<8x32xbf16> to vector<8x8xbf16>
    %40 = vector.extract_strided_slice %38 {offsets = [0, 8], sizes = [8, 8], strides = [1, 1]} : vector<8x32xbf16> to vector<8x8xbf16>
    %41 = vector.extract_strided_slice %38 {offsets = [0, 16], sizes = [8, 8], strides = [1, 1]} : vector<8x32xbf16> to vector<8x8xbf16>
    %42 = vector.extract_strided_slice %38 {offsets = [0, 24], sizes = [8, 8], strides = [1, 1]} : vector<8x32xbf16> to vector<8x8xbf16>
    %43 = vector.shape_cast %39 : vector<8x8xbf16> to vector<1x8x8xbf16>
    %44 = vector.shape_cast %40 : vector<8x8xbf16> to vector<1x8x8xbf16>
    %45 = vector.shape_cast %41 : vector<8x8xbf16> to vector<1x8x8xbf16>
    %46 = vector.shape_cast %42 : vector<8x8xbf16> to vector<1x8x8xbf16>
    %47 = tpu.concatenate %43, %44, %45, %46 in 0 : vector<1x8x8xbf16>, vector<1x8x8xbf16>, vector<1x8x8xbf16>, vector<1x8x8xbf16> -> vector<4x8x8xbf16>
    %48 = vector.extract_strided_slice %37 {offsets = [0, 32], sizes = [8, 32], strides = [1, 1]} : vector<8x96xbf16> to vector<8x32xbf16>
    %49 = vector.extract_strided_slice %48 {offsets = [0, 0], sizes = [8, 8], strides = [1, 1]} : vector<8x32xbf16> to vector<8x8xbf16>
    %50 = vector.extract_strided_slice %48 {offsets = [0, 8], sizes = [8, 8], strides = [1, 1]} : vector<8x32xbf16> to vector<8x8xbf16>
    %51 = vector.extract_strided_slice %48 {offsets = [0, 16], sizes = [8, 8], strides = [1, 1]} : vector<8x32xbf16> to vector<8x8xbf16>
    %52 = vector.extract_strided_slice %48 {offsets = [0, 24], sizes = [8, 8], strides = [1, 1]} : vector<8x32xbf16> to vector<8x8xbf16>
    %53 = vector.shape_cast %49 : vector<8x8xbf16> to vector<1x8x8xbf16>
    %54 = vector.shape_cast %50 : vector<8x8xbf16> to vector<1x8x8xbf16>
    %55 = vector.shape_cast %51 : vector<8x8xbf16> to vector<1x8x8xbf16>
    %56 = vector.shape_cast %52 : vector<8x8xbf16> to vector<1x8x8xbf16>
    %57 = tpu.concatenate %53, %54, %55, %56 in 0 : vector<1x8x8xbf16>, vector<1x8x8xbf16>, vector<1x8x8xbf16>, vector<1x8x8xbf16> -> vector<4x8x8xbf16>
    %58 = vector.extract_strided_slice %37 {offsets = [0, 64], sizes = [8, 32], strides = [1, 1]} : vector<8x96xbf16> to vector<8x32xbf16>
    %59 = vector.extract_strided_slice %58 {offsets = [0, 0], sizes = [8, 8], strides = [1, 1]} : vector<8x32xbf16> to vector<8x8xbf16>
    %60 = vector.extract_strided_slice %58 {offsets = [0, 8], sizes = [8, 8], strides = [1, 1]} : vector<8x32xbf16> to vector<8x8xbf16>
    %61 = vector.extract_strided_slice %58 {offsets = [0, 16], sizes = [8, 8], strides = [1, 1]} : vector<8x32xbf16> to vector<8x8xbf16>
    %62 = vector.extract_strided_slice %58 {offsets = [0, 24], sizes = [8, 8], strides = [1, 1]} : vector<8x32xbf16> to vector<8x8xbf16>
    %63 = vector.shape_cast %59 : vector<8x8xbf16> to vector<1x8x8xbf16>
    %64 = vector.shape_cast %60 : vector<8x8xbf16> to vector<1x8x8xbf16>
    %65 = vector.shape_cast %61 : vector<8x8xbf16> to vector<1x8x8xbf16>
    %66 = vector.shape_cast %62 : vector<8x8xbf16> to vector<1x8x8xbf16>
    %67 = tpu.concatenate %63, %64, %65, %66 in 0 : vector<1x8x8xbf16>, vector<1x8x8xbf16>, vector<1x8x8xbf16>, vector<1x8x8xbf16> -> vector<4x8x8xbf16>
    %cst_10 = arith.constant dense<0.000000e+00> : vector<4x8x8xf32>
    %68 = tpu.matmul %47, %57, %cst_10 {dimension_numbers = #tpu.dot_dimension_numbers<[2], [2], [1], [1], [0, 0, 0, 1, 1, 1], [0], [0]>} : vector<4x8x8xbf16>, vector<4x8x8xbf16>, vector<4x8x8xf32> -> vector<4x8x8xf32>
    %c0_11 = arith.constant 0 : index
    %c0_12 = arith.constant 0 : index
    %c0_13 = arith.constant 0 : index
    %69 = vector.load %arg2[%c0_11, %c0_12, %c0_13] : memref<1x1x8xf32, #tpu.memory_space<vmem>>, vector<1x1x8xf32>
    %70 = vector.shape_cast %69 : vector<1x1x8xf32> to vector<1x8xf32>
    %cst_14 = arith.constant -1.000000e+09 : f32
    %71 = vector.broadcast %cst_14 : f32 to vector<1x8xf32>
    %72 = arith.mulf %70, %71 : vector<1x8xf32>
    %73 = vector.shape_cast %72 : vector<1x8xf32> to vector<1x1x8xf32>
    %74 = vector.broadcast %73 : vector<1x1x8xf32> to vector<4x8x8xf32>
    %75 = arith.addf %68, %74 : vector<4x8x8xf32>
    %cst_15 = arith.constant dense<0xFF800000> : vector<4x8xf32>
    %76 = vector.multi_reduction <maximumf>, %75, %cst_15 [2] : vector<4x8x8xf32> to vector<4x8xf32>
    %77 = vector.shape_cast %76 : vector<4x8xf32> to vector<4x8x1xf32>
    %78 = vector.broadcast %77 : vector<4x8x1xf32> to vector<4x8x8xf32>
    %79 = arith.subf %75, %78 : vector<4x8x8xf32>
    %80 = math.exp %79 : vector<4x8x8xf32>
    %cst_16 = arith.constant dense<0.000000e+00> : vector<4x8xf32>
    %81 = vector.multi_reduction <add>, %80, %cst_16 [2] : vector<4x8x8xf32> to vector<4x8xf32>
    %82 = vector.shape_cast %81 : vector<4x8xf32> to vector<4x8x1xf32>
    %83 = tpu.reciprocal %82 {approx = true} : vector<4x8x1xf32> -> vector<4x8x1xf32>
    %84 = vector.broadcast %83 : vector<4x8x1xf32> to vector<4x8x8xf32>
    %85 = arith.mulf %80, %84 : vector<4x8x8xf32>
    %86 = arith.truncf %85 : vector<4x8x8xf32> to vector<4x8x8xbf16>
    %cst_17 = arith.constant dense<0.000000e+00> : vector<4x8x8xf32>
    %87 = tpu.matmul %86, %67, %cst_17 {dimension_numbers = #tpu.dot_dimension_numbers<[2], [1], [1], [2], [0, 0, 0, 1, 1, 2], [0], [0]>} : vector<4x8x8xbf16>, vector<4x8x8xbf16>, vector<4x8x8xf32> -> vector<4x8x8xf32>
    %88 = vector.extract_strided_slice %87 {offsets = [0, 0, 0], sizes = [1, 8, 8], strides = [1, 1, 1]} : vector<4x8x8xf32> to vector<1x8x8xf32>
    %89 = vector.shape_cast %88 : vector<1x8x8xf32> to vector<8x8xf32>
    %90 = vector.extract_strided_slice %87 {offsets = [1, 0, 0], sizes = [1, 8, 8], strides = [1, 1, 1]} : vector<4x8x8xf32> to vector<1x8x8xf32>
    %91 = vector.shape_cast %90 : vector<1x8x8xf32> to vector<8x8xf32>
    %92 = vector.extract_strided_slice %87 {offsets = [2, 0, 0], sizes = [1, 8, 8], strides = [1, 1, 1]} : vector<4x8x8xf32> to vector<1x8x8xf32>
    %93 = vector.shape_cast %92 : vector<1x8x8xf32> to vector<8x8xf32>
    %94 = vector.extract_strided_slice %87 {offsets = [3, 0, 0], sizes = [1, 8, 8], strides = [1, 1, 1]} : vector<4x8x8xf32> to vector<1x8x8xf32>
    %95 = vector.shape_cast %94 : vector<1x8x8xf32> to vector<8x8xf32>
    %96 = tpu.concatenate %89, %91, %93, %95 in 1 : vector<8x8xf32>, vector<8x8xf32>, vector<8x8xf32>, vector<8x8xf32> -> vector<8x32xf32>
    %97 = arith.truncf %96 : vector<8x32xf32> to vector<8x32xbf16>
    %c0_18 = arith.constant 0 : index
    %c0_19 = arith.constant 0 : index
    %98 = vector.load %arg4[%c0_18, %c0_19] : memref<32x32xbf16, #tpu.memory_space<vmem>>, vector<32x32xbf16>
    %cst_20 = arith.constant dense<0.000000e+00> : vector<8x32xf32>
    %99 = tpu.matmul %97, %98, %cst_20 {dimension_numbers = #tpu.dot_dimension_numbers<[1], [0], [0], [1], [0, 0, 1, 1], [], []>} : vector<8x32xbf16>, vector<32x32xbf16>, vector<8x32xf32> -> vector<8x32xf32>
    %100 = vector.broadcast %6 : vector<1x32xf32> to vector<8x32xf32>
    %101 = arith.addf %99, %100 : vector<8x32xf32>
    %102 = arith.addf %0, %101 : vector<8x32xf32>
    %cst_21 = arith.constant dense<0.000000e+00> : vector<8xf32>
    %103 = vector.multi_reduction <add>, %102, %cst_21 [1] : vector<8x32xf32> to vector<8xf32>
    %104 = vector.shape_cast %103 : vector<8xf32> to vector<8x1xf32>
    %cst_22 = arith.constant 3.200000e+01 : f32
    %105 = vector.broadcast %cst_22 : f32 to vector<8x1xf32>
    %106 = arith.divf %104, %105 : vector<8x1xf32>
    %107 = vector.broadcast %106 : vector<8x1xf32> to vector<8x32xf32>
    %108 = arith.subf %102, %107 : vector<8x32xf32>
    %109 = arith.mulf %108, %108 : vector<8x32xf32>
    %cst_23 = arith.constant dense<0.000000e+00> : vector<8xf32>
    %110 = vector.multi_reduction <add>, %109, %cst_23 [1] : vector<8x32xf32> to vector<8xf32>
    %111 = vector.shape_cast %110 : vector<8xf32> to vector<8x1xf32>
    %cst_24 = arith.constant 3.200000e+01 : f32
    %112 = vector.broadcast %cst_24 : f32 to vector<8x1xf32>
    %113 = arith.divf %111, %112 : vector<8x1xf32>
    %114 = vector.broadcast %106 : vector<8x1xf32> to vector<8x32xf32>
    %115 = arith.subf %102, %114 : vector<8x32xf32>
    %cst_25 = arith.constant 9.99999997E-7 : f32
    %116 = vector.broadcast %cst_25 : f32 to vector<8x1xf32>
    %117 = arith.addf %113, %116 : vector<8x1xf32>
    %118 = math.rsqrt %117 : vector<8x1xf32>
    %119 = vector.broadcast %118 : vector<8x1xf32> to vector<8x32xf32>
    %120 = arith.mulf %115, %119 : vector<8x32xf32>
    %121 = vector.broadcast %4 : vector<1x32xf32> to vector<8x32xf32>
    %122 = arith.mulf %120, %121 : vector<8x32xf32>
    %123 = vector.broadcast %5 : vector<1x32xf32> to vector<8x32xf32>
    %124 = arith.addf %122, %123 : vector<8x32xf32>
    %125 = arith.truncf %124 : vector<8x32xf32> to vector<8x32xbf16>
    %c0_26 = arith.constant 0 : index
    %c0_27 = arith.constant 0 : index
    %126 = vector.load %arg5[%c0_26, %c0_27] : memref<32x64xbf16, #tpu.memory_space<vmem>>, vector<32x64xbf16>
    %cst_28 = arith.constant dense<0.000000e+00> : vector<8x64xf32>
    %127 = tpu.matmul %125, %126, %cst_28 {dimension_numbers = #tpu.dot_dimension_numbers<[1], [0], [0], [1], [0, 0, 1, 1], [], []>} : vector<8x32xbf16>, vector<32x64xbf16>, vector<8x64xf32> -> vector<8x64xf32>
    %128 = vector.broadcast %9 : vector<1x64xf32> to vector<8x64xf32>
    %129 = arith.addf %127, %128 : vector<8x64xf32>
    %cst_29 = arith.constant 0.000000e+00 : f32
    %130 = vector.broadcast %cst_29 : f32 to vector<8x64xf32>
    %131 = arith.maximumf %129, %130 : vector<8x64xf32>
    %132 = arith.truncf %131 : vector<8x64xf32> to vector<8x64xbf16>
    %c0_30 = arith.constant 0 : index
    %c0_31 = arith.constant 0 : index
    %133 = vector.load %arg6[%c0_30, %c0_31] : memref<64x32xbf16, #tpu.memory_space<vmem>>, vector<64x32xbf16>
    %cst_32 = arith.constant dense<0.000000e+00> : vector<8x32xf32>
    %134 = tpu.matmul %132, %133, %cst_32 {dimension_numbers = #tpu.dot_dimension_numbers<[1], [0], [0], [1], [0, 0, 1, 1], [], []>} : vector<8x64xbf16>, vector<64x32xbf16>, vector<8x32xf32> -> vector<8x32xf32>
    %135 = vector.broadcast %7 : vector<1x32xf32> to vector<8x32xf32>
    %136 = arith.addf %134, %135 : vector<8x32xf32>
    %137 = arith.addf %102, %136 : vector<8x32xf32>
    %c0_33 = arith.constant 0 : index
    %c0_34 = arith.constant 0 : index
    %138 = vector.load %arg8[%c0_33, %c0_34] : memref<8x32xf32, #tpu.memory_space<vmem>>, vector<8x32xf32>
    tpu.vector_store %arg8[%c0_33, %c0_34], %137 {strides = array<i32>} : memref<8x32xf32, #tpu.memory_space<vmem>>, vector<8x32xf32>,
    return
  }
  func.func @transform_0(%arg0: i32) -> (i32, i32) {
    %c0_i32 = arith.constant 0 : i32
    %c0_i32_0 = arith.constant 0 : i32
    return %arg0, %c0_i32 : i32, i32
  }
  func.func @transform_1(%arg0: i32) -> (i32, i32, i32) {
    %c0_i32 = arith.constant 0 : i32
    %c0_i32_0 = arith.constant 0 : i32
    %c0_i32_1 = arith.constant 0 : i32
    return %arg0, %c0_i32, %c0_i32_0 : i32, i32, i32
  }
  func.func @transform_2(%arg0: i32) -> (i32, i32) {
    %c0_i32 = arith.constant 0 : i32
    %c0_i32_0 = arith.constant 0 : i32
    %c0_i32_1 = arith.constant 0 : i32
    return %c0_i32, %c0_i32_0 : i32, i32
  }
  func.func @transform_3(%arg0: i32) -> (i32, i32) {
    %c0_i32 = arith.constant 0 : i32
    %c0_i32_0 = arith.constant 0 : i32
    %c0_i32_1 = arith.constant 0 : i32
    return %c0_i32, %c0_i32_0 : i32, i32
  }
  func.func @transform_4(%arg0: i32) -> (i32, i32) {
    %c0_i32 = arith.constant 0 : i32
    %c0_i32_0 = arith.constant 0 : i32
    %c0_i32_1 = arith.constant 0 : i32
    return %c0_i32, %c0_i32_0 : i32, i32
  }
  func.func @transform_5(%arg0: i32) -> (i32, i32) {
    %c0_i32 = arith.constant 0 : i32
    %c0_i32_0 = arith.constant 0 : i32
    %c0_i32_1 = arith.constant 0 : i32
    return %c0_i32, %c0_i32_0 : i32, i32
  }
  func.func @transform_6(%arg0: i32) -> (i32, i32) {
    %c0_i32 = arith.constant 0 : i32
    %c0_i32_0 = arith.constant 0 : i32
    %c0_i32_1 = arith.constant 0 : i32
    return %c0_i32, %c0_i32_0 : i32, i32
  }
  func.func @transform_7(%arg0: i32) -> (i32, i32) {
    %c0_i32 = arith.constant 0 : i32
    %c0_i32_0 = arith.constant 0 : i32
    return %arg0, %c0_i32 : i32, i32
  }
}

module attributes {stable_mosaic.version = 11 : i64} {
  func.func @_encoder_layer_kernel(%arg0: i32, %arg1: memref<8x32xf32, #tpu.memory_space<vmem>>, %arg2: memref<1x1x8xf32, #tpu.memory_space<vmem>>, %arg3: memref<32x96xbf16, #tpu.memory_space<vmem>>, %arg4: memref<32x32xbf16, #tpu.memory_space<vmem>>, %arg5: memref<32x64xbf16, #tpu.memory_space<vmem>>, %arg6: memref<64x32xbf16, #tpu.memory_space<vmem>>, %arg7: memref<8x96xf32, #tpu.memory_space<vmem>>, %arg8: memref<8x32xf32, #tpu.memory_space<vmem>>) attributes {dimension_semantics = [#tpu.dimension_semantics<parallel>], iteration_bounds = array<i64: 2>, scalar_prefetch = 0 : i64, scratch_operands = 0 : i64, tpu.core_type = #tpu.core_type<tc>, window_params = [{transform_indices = @transform_0, window_bounds = array<i64: 8, 32>}, {transform_indices = @transform_1, window_bounds = array<i64: 1, 1, 8>}, {pipeline_mode = #tpu.pipeline_mode<synchronous>, transform_indices = @transform_2, window_bounds = array<i64: 32, 96>}, {pipeline_mode = #tpu.pipeline_mode<synchronous>, transform_indices = @transform_3, window_bounds = array<i64: 32, 32>}, {pipeline_mode = #tpu.pipeline_mode<synchronous>, transform_indices = @transform_4, window_bounds = array<i64: 32, 64>}, {pipeline_mode = #tpu.pipeline_mode<synchronous>, transform_indices = @transform_5, window_bounds = array<i64: 64, 32>}, {pipeline_mode = #tpu.pipeline_mode<synchronous>, transform_indices = @transform_6, window_bounds = array<i64: 8, 96>}, {transform_indices = @transform_7, window_bounds = array<i64: 8, 32>}]} {
    %c0 = arith.constant 0 : index
    %c0_0 = arith.constant 0 : index
    %0 = vector.load %arg1[%c0, %c0_0] : memref<8x32xf32, #tpu.memory_space<vmem>>, vector<8x32xf32>
    %c0_1 = arith.constant 0 : index
    %c0_2 = arith.constant 0 : index
    %1 = vector.load %arg7[%c0_1, %c0_2] : memref<8x96xf32, #tpu.memory_space<vmem>>, vector<8x96xf32>
    %2 = vector.extract_strided_slice %1 {offsets = [0, 0], sizes = [1, 32], strides = [1, 1]} : vector<8x96xf32> to vector<1x32xf32>
    %3 = vector.extract_strided_slice %1 {offsets = [1, 0], sizes = [1, 32], strides = [1, 1]} : vector<8x96xf32> to vector<1x32xf32>
    %4 = vector.extract_strided_slice %1 {offsets = [2, 0], sizes = [1, 32], strides = [1, 1]} : vector<8x96xf32> to vector<1x32xf32>
    %5 = vector.extract_strided_slice %1 {offsets = [3, 0], sizes = [1, 32], strides = [1, 1]} : vector<8x96xf32> to vector<1x32xf32>
    %6 = vector.extract_strided_slice %1 {offsets = [4, 0], sizes = [1, 32], strides = [1, 1]} : vector<8x96xf32> to vector<1x32xf32>
    %7 = vector.extract_strided_slice %1 {offsets = [5, 0], sizes = [1, 32], strides = [1, 1]} : vector<8x96xf32> to vector<1x32xf32>
    %8 = vector.extract_strided_slice %1 {offsets = [6, 0], sizes = [1, 96], strides = [1, 1]} : vector<8x96xf32> to vector<1x96xf32>
    %9 = vector.extract_strided_slice %1 {offsets = [7, 0], sizes = [1, 64], strides = [1, 1]} : vector<8x96xf32> to vector<1x64xf32>
    %cst = arith.constant dense<0.000000e+00> : vector<8xf32>
    %10 = vector.multi_reduction <add>, %0, %cst [1] : vector<8x32xf32> to vector<8xf32>
    %11 = vector.shape_cast %10 : vector<8xf32> to vector<8x1xf32>
    %cst_3 = arith.constant 3.200000e+01 : f32
    %12 = vector.broadcast %cst_3 : f32 to vector<8x1xf32>
    %13 = arith.divf %11, %12 : vector<8x1xf32>
    %14 = vector.broadcast %13 : vector<8x1xf32> to vector<8x32xf32>
    %15 = arith.subf %0, %14 : vector<8x32xf32>
    %16 = arith.mulf %15, %15 : vector<8x32xf32>
    %cst_4 = arith.constant dense<0.000000e+00> : vector<8xf32>
    %17 = vector.multi_reduction <add>, %16, %cst_4 [1] : vector<8x32xf32> to vector<8xf32>
    %18 = vector.shape_cast %17 : vector<8xf32> to vector<8x1xf32>
    %cst_5 = arith.constant 3.200000e+01 : f32
    %19 = vector.broadcast %cst_5 : f32 to vector<8x1xf32>
    %20 = arith.divf %18, %19 : vector<8x1xf32>
    %21 = vector.broadcast %13 : vector<8x1xf32> to vector<8x32xf32>
    %22 = arith.subf %0, %21 : vector<8x32xf32>
    %cst_6 = arith.constant 9.99999997E-7 : f32
    %23 = vector.broadcast %cst_6 : f32 to vector<8x1xf32>
    %24 = arith.addf %20, %23 : vector<8x1xf32>
    %25 = math.rsqrt %24 : vector<8x1xf32>
    %26 = vector.broadcast %25 : vector<8x1xf32> to vector<8x32xf32>
    %27 = arith.mulf %22, %26 : vector<8x32xf32>
    %28 = vector.broadcast %2 : vector<1x32xf32> to vector<8x32xf32>
    %29 = arith.mulf %27, %28 : vector<8x32xf32>
    %30 = vector.broadcast %3 : vector<1x32xf32> to vector<8x32xf32>
    %31 = arith.addf %29, %30 : vector<8x32xf32>
    %32 = arith.truncf %31 : vector<8x32xf32> to vector<8x32xbf16>
    %c0_7 = arith.constant 0 : index
    %c0_8 = arith.constant 0 : index
    %33 = vector.load %arg3[%c0_7, %c0_8] : memref<32x96xbf16, #tpu.memory_space<vmem>>, vector<32x96xbf16>
    %cst_9 = arith.constant dense<0.000000e+00> : vector<8x96xf32>
    %34 = tpu.matmul %32, %33, %cst_9 {dimension_numbers = #tpu.dot_dimension_numbers<[1], [0], [0], [1], [0, 0, 1, 1], [], []>} : vector<8x32xbf16>, vector<32x96xbf16>, vector<8x96xf32> -> vector<8x96xf32>
    %35 = vector.broadcast %8 : vector<1x96xf32> to vector<8x96xf32>
    %36 = arith.addf %34, %35 : vector<8x96xf32>
    %37 = arith.truncf %36 : vector<8x96xf32> to vector<8x96xbf16>
    %38 = vector.extract_strided_slice %37 {offsets = [0, 0], sizes = [8, 32], strides = [1, 1]} : vector<8x96xbf16> to vector<8x32xbf16>
    %39 = vector.extract_strided_slice %38 {offsets = [0, 0], sizes = [8, 8], strides = [1, 1]} : vector<8x32xbf16> to vector<8x8xbf16>
    %40 = vector.extract_strided_slice %38 {offsets = [0, 8], sizes = [8, 8], strides = [1, 1]} : vector<8x32xbf16> to vector<8x8xbf16>
    %41 = vector.extract_strided_slice %38 {offsets = [0, 16], sizes = [8, 8], strides = [1, 1]} : vector<8x32xbf16> to vector<8x8xbf16>
    %42 = vector.extract_strided_slice %38 {offsets = [0, 24], sizes = [8, 8], strides = [1, 1]} : vector<8x32xbf16> to vector<8x8xbf16>
    %43 = vector.shape_cast %39 : vector<8x8xbf16> to vector<1x8x8xbf16>
    %44 = vector.shape_cast %40 : vector<8x8xbf16> to vector<1x8x8xbf16>
    %45 = vector.shape_cast %41 : vector<8x8xbf16> to vector<1x8x8xbf16>
    %46 = vector.shape_cast %42 : vector<8x8xbf16> to vector<1x8x8xbf16>
    %47 = tpu.concatenate %43, %44, %45, %46 in 0 : vector<1x8x8xbf16>, vector<1x8x8xbf16>, vector<1x8x8xbf16>, vector<1x8x8xbf16> -> vector<4x8x8xbf16>
    %48 = vector.extract_strided_slice %37 {offsets = [0, 32], sizes = [8, 32], strides = [1, 1]} : vector<8x96xbf16> to vector<8x32xbf16>
    %49 = vector.extract_strided_slice %48 {offsets = [0, 0], sizes = [8, 8], strides = [1, 1]} : vector<8x32xbf16> to vector<8x8xbf16>
    %50 = vector.extract_strided_slice %48 {offsets = [0, 8], sizes = [8, 8], strides = [1, 1]} : vector<8x32xbf16> to vector<8x8xbf16>
    %51 = vector.extract_strided_slice %48 {offsets = [0, 16], sizes = [8, 8], strides = [1, 1]} : vector<8x32xbf16> to vector<8x8xbf16>
    %52 = vector.extract_strided_slice %48 {offsets = [0, 24], sizes = [8, 8], strides = [1, 1]} : vector<8x32xbf16> to vector<8x8xbf16>
    %53 = vector.shape_cast %49 : vector<8x8xbf16> to vector<1x8x8xbf16>
    %54 = vector.shape_cast %50 : vector<8x8xbf16> to vector<1x8x8xbf16>
    %55 = vector.shape_cast %51 : vector<8x8xbf16> to vector<1x8x8xbf16>
    %56 = vector.shape_cast %52 : vector<8x8xbf16> to vector<1x8x8xbf16>
    %57 = tpu.concatenate %53, %54, %55, %56 in 0 : vector<1x8x8xbf16>, vector<1x8x8xbf16>, vector<1x8x8xbf16>, vector<1x8x8xbf16> -> vector<4x8x8xbf16>
    %58 = vector.extract_strided_slice %37 {offsets = [0, 64], sizes = [8, 32], strides = [1, 1]} : vector<8x96xbf16> to vector<8x32xbf16>
    %59 = vector.extract_strided_slice %58 {offsets = [0, 0], sizes = [8, 8], strides = [1, 1]} : vector<8x32xbf16> to vector<8x8xbf16>
    %60 = vector.extract_strided_slice %58 {offsets = [0, 8], sizes = [8, 8], strides = [1, 1]} : vector<8x32xbf16> to vector<8x8xbf16>
    %61 = vector.extract_strided_slice %58 {offsets = [0, 16], sizes = [8, 8], strides = [1, 1]} : vector<8x32xbf16> to vector<8x8xbf16>
    %62 = vector.extract_strided_slice %58 {offsets = [0, 24], sizes = [8, 8], strides = [1, 1]} : vector<8x32xbf16> to vector<8x8xbf16>
    %63 = vector.shape_cast %59 : vector<8x8xbf16> to vector<1x8x8xbf16>
    %64 = vector.shape_cast %60 : vector<8x8xbf16> to vector<1x8x8xbf16>
    %65 = vector.shape_cast %61 : vector<8x8xbf16> to vector<1x8x8xbf16>
    %66 = vector.shape_cast %62 : vector<8x8xbf16> to vector<1x8x8xbf16>
    %67 = tpu.concatenate %63, %64, %65, %66 in 0 : vector<1x8x8xbf16>, vector<1x8x8xbf16>, vector<1x8x8xbf16>, vector<1x8x8xbf16> -> vector<4x8x8xbf16>
    %cst_10 = arith.constant dense<0.000000e+00> : vector<4x8x8xf32>
    %68 = tpu.matmul %47, %57, %cst_10 {dimension_numbers = #tpu.dot_dimension_numbers<[2], [2], [1], [1], [0, 0, 0, 1, 1, 1], [0], [0]>} : vector<4x8x8xbf16>, vector<4x8x8xbf16>, vector<4x8x8xf32> -> vector<4x8x8xf32>
    %c0_11 = arith.constant 0 : index
    %c0_12 = arith.constant 0 : index
    %c0_13 = arith.constant 0 : index
    %69 = vector.load %arg2[%c0_11, %c0_12, %c0_13] : memref<1x1x8xf32, #tpu.memory_space<vmem>>, vector<1x1x8xf32>
    %70 = vector.shape_cast %69 : vector<1x1x8xf32> to vector<1x8xf32>
    %cst_14 = arith.constant -1.000000e+09 : f32
    %71 = vector.broadcast %cst_14 : f32 to vector<1x8xf32>
    %72 = arith.mulf %70, %71 : vector<1x8xf32>
    %73 = vector.shape_cast %72 : vector<1x8xf32> to vector<1x1x8xf32>
    %74 = vector.broadcast %73 : vector<1x1x8xf32> to vector<4x8x8xf32>
    %75 = arith.addf %68, %74 : vector<4x8x8xf32>
    %cst_15 = arith.constant dense<0xFF800000> : vector<4x8xf32>
    %76 = vector.multi_reduction <maximumf>, %75, %cst_15 [2] : vector<4x8x8xf32> to vector<4x8xf32>
    %77 = vector.shape_cast %76 : vector<4x8xf32> to vector<4x8x1xf32>
    %78 = vector.broadcast %77 : vector<4x8x1xf32> to vector<4x8x8xf32>
    %79 = arith.subf %75, %78 : vector<4x8x8xf32>
    %80 = math.exp %79 : vector<4x8x8xf32>
    %cst_16 = arith.constant dense<0.000000e+00> : vector<4x8xf32>
    %81 = vector.multi_reduction <add>, %80, %cst_16 [2] : vector<4x8x8xf32> to vector<4x8xf32>
    %82 = vector.shape_cast %81 : vector<4x8xf32> to vector<4x8x1xf32>
    %83 = tpu.reciprocal %82 {approx = true} : vector<4x8x1xf32> -> vector<4x8x1xf32>
    %84 = vector.broadcast %83 : vector<4x8x1xf32> to vector<4x8x8xf32>
    %85 = arith.mulf %80, %84 : vector<4x8x8xf32>
    %86 = arith.truncf %85 : vector<4x8x8xf32> to vector<4x8x8xbf16>
    %cst_17 = arith.constant dense<0.000000e+00> : vector<4x8x8xf32>
    %87 = tpu.matmul %86, %67, %cst_17 {dimension_numbers = #tpu.dot_dimension_numbers<[2], [1], [1], [2], [0, 0, 0, 1, 1, 2], [0], [0]>} : vector<4x8x8xbf16>, vector<4x8x8xbf16>, vector<4x8x8xf32> -> vector<4x8x8xf32>
    %88 = vector.extract_strided_slice %87 {offsets = [0, 0, 0], sizes = [1, 8, 8], strides = [1, 1, 1]} : vector<4x8x8xf32> to vector<1x8x8xf32>
    %89 = vector.shape_cast %88 : vector<1x8x8xf32> to vector<8x8xf32>
    %90 = vector.extract_strided_slice %87 {offsets = [1, 0, 0], sizes = [1, 8, 8], strides = [1, 1, 1]} : vector<4x8x8xf32> to vector<1x8x8xf32>
    %91 = vector.shape_cast %90 : vector<1x8x8xf32> to vector<8x8xf32>
    %92 = vector.extract_strided_slice %87 {offsets = [2, 0, 0], sizes = [1, 8, 8], strides = [1, 1, 1]} : vector<4x8x8xf32> to vector<1x8x8xf32>
    %93 = vector.shape_cast %92 : vector<1x8x8xf32> to vector<8x8xf32>
    %94 = vector.extract_strided_slice %87 {offsets = [3, 0, 0], sizes = [1, 8, 8], strides = [1, 1, 1]} : vector<4x8x8xf32> to vector<1x8x8xf32>
    %95 = vector.shape_cast %94 : vector<1x8x8xf32> to vector<8x8xf32>
    %96 = tpu.concatenate %89, %91, %93, %95 in 1 : vector<8x8xf32>, vector<8x8xf32>, vector<8x8xf32>, vector<8x8xf32> -> vector<8x32xf32>
    %97 = arith.truncf %96 : vector<8x32xf32> to vector<8x32xbf16>
    %c0_18 = arith.constant 0 : index
    %c0_19 = arith.constant 0 : index
    %98 = vector.load %arg4[%c0_18, %c0_19] : memref<32x32xbf16, #tpu.memory_space<vmem>>, vector<32x32xbf16>
    %cst_20 = arith.constant dense<0.000000e+00> : vector<8x32xf32>
    %99 = tpu.matmul %97, %98, %cst_20 {dimension_numbers = #tpu.dot_dimension_numbers<[1], [0], [0], [1], [0, 0, 1, 1], [], []>} : vector<8x32xbf16>, vector<32x32xbf16>, vector<8x32xf32> -> vector<8x32xf32>
    %100 = vector.broadcast %6 : vector<1x32xf32> to vector<8x32xf32>
    %101 = arith.addf %99, %100 : vector<8x32xf32>
    %102 = arith.addf %0, %101 : vector<8x32xf32>
    %cst_21 = arith.constant dense<0.000000e+00> : vector<8xf32>
    %103 = vector.multi_reduction <add>, %102, %cst_21 [1] : vector<8x32xf32> to vector<8xf32>
    %104 = vector.shape_cast %103 : vector<8xf32> to vector<8x1xf32>
    %cst_22 = arith.constant 3.200000e+01 : f32
    %105 = vector.broadcast %cst_22 : f32 to vector<8x1xf32>
    %106 = arith.divf %104, %105 : vector<8x1xf32>
    %107 = vector.broadcast %106 : vector<8x1xf32> to vector<8x32xf32>
    %108 = arith.subf %102, %107 : vector<8x32xf32>
    %109 = arith.mulf %108, %108 : vector<8x32xf32>
    %cst_23 = arith.constant dense<0.000000e+00> : vector<8xf32>
    %110 = vector.multi_reduction <add>, %109, %cst_23 [1] : vector<8x32xf32> to vector<8xf32>
    %111 = vector.shape_cast %110 : vector<8xf32> to vector<8x1xf32>
    %cst_24 = arith.constant 3.200000e+01 : f32
    %112 = vector.broadcast %cst_24 : f32 to vector<8x1xf32>
    %113 = arith.divf %111, %112 : vector<8x1xf32>
    %114 = vector.broadcast %106 : vector<8x1xf32> to vector<8x32xf32>
    %115 = arith.subf %102, %114 : vector<8x32xf32>
    %cst_25 = arith.constant 9.99999997E-7 : f32
    %116 = vector.broadcast %cst_25 : f32 to vector<8x1xf32>
    %117 = arith.addf %113, %116 : vector<8x1xf32>
    %118 = math.rsqrt %117 : vector<8x1xf32>
    %119 = vector.broadcast %118 : vector<8x1xf32> to vector<8x32xf32>
    %120 = arith.mulf %115, %119 : vector<8x32xf32>
    %121 = vector.broadcast %4 : vector<1x32xf32> to vector<8x32xf32>
    %122 = arith.mulf %120, %121 : vector<8x32xf32>
    %123 = vector.broadcast %5 : vector<1x32xf32> to vector<8x32xf32>
    %124 = arith.addf %122, %123 : vector<8x32xf32>
    %125 = arith.truncf %124 : vector<8x32xf32> to vector<8x32xbf16>
    %c0_26 = arith.constant 0 : index
    %c0_27 = arith.constant 0 : index
    %126 = vector.load %arg5[%c0_26, %c0_27] : memref<32x64xbf16, #tpu.memory_space<vmem>>, vector<32x64xbf16>
    %cst_28 = arith.constant dense<0.000000e+00> : vector<8x64xf32>
    %127 = tpu.matmul %125, %126, %cst_28 {dimension_numbers = #tpu.dot_dimension_numbers<[1], [0], [0], [1], [0, 0, 1, 1], [], []>} : vector<8x32xbf16>, vector<32x64xbf16>, vector<8x64xf32> -> vector<8x64xf32>
    %128 = vector.broadcast %9 : vector<1x64xf32> to vector<8x64xf32>
    %129 = arith.addf %127, %128 : vector<8x64xf32>
    %cst_29 = arith.constant 0.000000e+00 : f32
    %130 = vector.broadcast %cst_29 : f32 to vector<8x64xf32>
    %131 = arith.maximumf %129, %130 : vector<8x64xf32>
    %132 = arith.truncf %131 : vector<8x64xf32> to vector<8x64xbf16>
    %c0_30 = arith.constant 0 : index
    %c0_31 = arith.constant 0 : index
    %133 = vector.load %arg6[%c0_30, %c0_31] : memref<64x32xbf16, #tpu.memory_space<vmem>>, vector<64x32xbf16>
    %cst_32 = arith.constant dense<0.000000e+00> : vector<8x32xf32>
    %134 = tpu.matmul %132, %133, %cst_32 {dimension_numbers = #tpu.dot_dimension_numbers<[1], [0], [0], [1], [0, 0, 1, 1], [], []>} : vector<8x64xbf16>, vector<64x32xbf16>, vector<8x32xf32> -> vector<8x32xf32>
    %135 = vector.broadcast %7 : vector<1x32xf32> to vector<8x32xf32>
    %136 = arith.addf %134, %135 : vector<8x32xf32>
    %137 = arith.addf %102, %136 : vector<8x32xf32>
    %c0_33 = arith.constant 0 : index
    %c0_34 = arith.constant 0 : index
    %138 = vector.load %arg8[%c0_33, %c0_34] : memref<8x32xf32, #tpu.memory_space<vmem>>, vector<8x32xf32>
    tpu.vector_store %arg8[%c0_33, %c0_34], %137 {strides = array<i32>} : memref<8x32xf32, #tpu.memory_space<vmem>>, vector<8x32xf32>,
    return
  }
  func.func @transform_0(%arg0: i32) -> (i32, i32) {
    %c0_i32 = arith.constant 0 : i32
    %c0_i32_0 = arith.constant 0 : i32
    return %arg0, %c0_i32 : i32, i32
  }
  func.func @transform_1(%arg0: i32) -> (i32, i32, i32) {
    %c0_i32 = arith.constant 0 : i32
    %c0_i32_0 = arith.constant 0 : i32
    %c0_i32_1 = arith.constant 0 : i32
    return %arg0, %c0_i32, %c0_i32_0 : i32, i32, i32
  }
  func.func @transform_2(%arg0: i32) -> (i32, i32) {
    %c0_i32 = arith.constant 0 : i32
    %c0_i32_0 = arith.constant 0 : i32
    %c0_i32_1 = arith.constant 0 : i32
    return %c0_i32, %c0_i32_0 : i32, i32
  }
  func.func @transform_3(%arg0: i32) -> (i32, i32) {
    %c0_i32 = arith.constant 0 : i32
    %c0_i32_0 = arith.constant 0 : i32
    %c0_i32_1 = arith.constant 0 : i32
    return %c0_i32, %c0_i32_0 : i32, i32
  }
  func.func @transform_4(%arg0: i32) -> (i32, i32) {
    %c0_i32 = arith.constant 0 : i32
    %c0_i32_0 = arith.constant 0 : i32
    %c0_i32_1 = arith.constant 0 : i32
    return %c0_i32, %c0_i32_0 : i32, i32
  }
  func.func @transform_5(%arg0: i32) -> (i32, i32) {
    %c0_i32 = arith.constant 0 : i32
    %c0_i32_0 = arith.constant 0 : i32
    %c0_i32_1 = arith.constant 0 : i32
    return %c0_i32, %c0_i32_0 : i32, i32
  }
  func.func @transform_6(%arg0: i32) -> (i32, i32) {
    %c0_i32 = arith.constant 0 : i32
    %c0_i32_0 = arith.constant 0 : i32
    %c0_i32_1 = arith.constant 0 : i32
    return %c0_i32, %c0_i32_0 : i32, i32
  }
  func.func @transform_7(%arg0: i32) -> (i32, i32) {
    %c0_i32 = arith.constant 0 : i32
    %c0_i32_0 = arith.constant 0 : i32
    return %arg0, %c0_i32 : i32, i32
  }
}

</mosaic_0001>

<bundles_post_ra>
// kernel: tpu_custom_call.1
= control target key start
LH: loop header
LB: loop body
LE: loop exit
PB: predicated region body
PF: predicated region fallthrough
CT: control target
= control target key end

     0   :  { %12 = vsyncpa [#allocation3], 0  ;;  %s1980_s0 = inlined_call_operand.vmem [shape: f32[16,32], index: 0, kind: input, shape index: {}]   ;;  %s1981_s1 = inlined_call_operand.vmem [shape: f32[2,1,8], index: 1, kind: input, shape index: {}]   ;;  %s1982_s2 = inlined_call_operand.vmem [shape: bf16[32,96], index: 2, kind: input, shape index: {}]   ;;  %s1983_s3 = inlined_call_operand.vmem [shape: bf16[32,32], index: 3, kind: input, shape index: {}]   ;;  %s1984_s4 = inlined_call_operand.hbm [shape: bf16[32,64], index: 4, kind: input, shape index: {}]   ;;  %s1985_s5 = inlined_call_operand.vmem [shape: bf16[64,32], index: 5, kind: input, shape index: {}]   ;;  %s1986_s6 = inlined_call_operand.hbm [shape: f32[8,96], index: 6, kind: input, shape index: {}]   ;;  %s1987_s7 = inlined_call_operand.hbm [shape: f32[16,32], index: 7, kind: output, shape index: {}]  }
   0x1   :  { %13 = vsyncpa [#allocation6], 0 }
   0x2   :  { %14 = vsyncpa [#allocation4], 0 }
   0x3   :  { %16 = vsyncpa [#allocation4 + $0x1], 0  ;;  %s1650_s24 = smov 0   ;;  %s1652_s25 = smov 0  }
   0x4   :  { %s1654_s26 = smov 0   ;;  %s1656_s27 = smov 0  }
   0x5 LB: > { %s1671_s28 = sadd.s32 4294967295, %s1593_s27   ;;  %s1215_s29 = sadd.s32 4294967294, %s1593_s27   ;;  %s1593_s27 = sphi %s1656_s27, %s2007_s27   ;;  %s1589_s26 = sphi %s1654_s26, %s2006_s26   ;;  %s1585_s25 = sphi %s1652_s25, %s2005_s25   ;;  %s1581_s24 = sphi %s1650_s24, %s2004_s24  }
   0x6   : > { %s1675_s30 = sadd.s32 1, %s1593_s27   ;;  %s186_s8 = sadd.s32 1, %s1589_s26 }
   0x7   : > { %s183_s9 = ssub.s32 %s1593_s27, %s1675_s30  ;;  %p196_p0 = scmp.ne.s32.totalorder %s1589_s26, %s1585_s25 }
   0x8   : > { %p184_p1 = scmp.eq.s32.totalorder %s183_s9, 0  ;;  %p197_p2 = scmp.eq.s32.totalorder %s1671_s28, 1 }
   0x9   : > { %p202_p3 = scmp.ne.s32.totalorder %s1585_s25, %s1581_s24  ;;  %p203_p4 = scmp.eq.s32.totalorder %s1215_s29, 1 }
   0xa   : > { %s1686_s10 = scalar_select %p184_p1, %s1589_s26, %s186_s8  }
   0xb   : > { %p1688_p5 = por %p197_p2, %p196_p0  ;;  %p1692_p6 = por %p203_p4, %p202_p3 }
   0xc   : > { %1991 = sst [smem:[#allocation11_spill]] %s1686_s10  ;;  %p1216_p7 = scmp.ge.s32.totalorder %s1593_s27, 1 }
   0xd   : > { %s1992_s11 = scalar_select %p1688_p5, 1, 0 }
   0xe   : > { %s1993_s12 = scalar_select %p1692_p6, 1, 0 }
   0xf   : > { %p210_p8 = scmp.lt.s32.totalorder %s1593_s27, 3  ;;  %p1988_p9 = scmp.eq.s32.totalorder %s1671_s28, 0 }
  0x10   : > { %s1595_s14 = smov [#allocation2]   ;;  %s1596_s17 = smov [#allocation5]  }
  0x11   : > { %p1699_p10 = pnand %p1216_p7, %p210_p8  ;;  %s228_s15 = sshll.u32 %s1595_s14, 4  ;;  %s229_s15 = int_to_ptr.vmem [resolvable:$true] %s228_s15 }
  0x12   : > { %s245_s18 = sshll.u32 %s1596_s17, 4  ;;  %s1467_s21 = scalar_lea.hbm %s1984_s4, 256  ;;  %s1711_s18 = int_to_ptr.vmem [resolvable:$true] %s245_s18 }
  0x13   : > { %s1994_s13 = scalar_select %p1699_p10, 1, 0 }
  0x14   : > { %p1375_p11 = pneg %p1699_p10  ;;  %p1468_p13 = scmp.ne.s32.totalorder %s1984_s4, %s1467_s21 }
  0x15   : > { %p1474_p3 = scmp.lt.u32.totalorder %s1467_s21, %s1984_s4 }
  0x16   : > { %p1707_p12 = pnand %p1988_p9, %p1375_p11 }
  0x18   : > { %p1469_p0 = pneg %p1707_p12 }
  0x1a   : > { %p1470_p1 = pnand %p1469_p0, %p1468_p13 }
  0x1c   : > { %p1471_p2 = pneg %p1470_p1 }
  0x1e   : > { %p1476_p4 = pnand %p1474_p3, %p1471_p2 }
  0x20   : > { %1479 = shalt.err (!%p1476_p4)
}
  0x21   : > { %s1480_s9 = scalar_lea.vmem %s229_s15, 256  ;;  %p1488_p9 = scmp.lt.s32.totalorder %s229_s15, %s229_s15 }
  0x22   : > { %p1481_p7 = scmp.ne.s32.totalorder %s229_s15, %s1480_s9  ;;  %p1489_p6 = scmp.lt.s32.totalorder %s1480_s9, %s1480_s9 }
  0x24   : > { %p1483_p8 = pnand %p1481_p7, %p1469_p0  ;;  %p1490_p5 = por %p1489_p6, %p1488_p9 }
  0x26   : > { %p1484_p11 = pneg %p1483_p8 }
  0x28   : > { %p1491_p10 = pnand %p1490_p5, %p1484_p11 }
  0x2a   : > { %1494 = shalt.err (!%p1491_p10)
}
  0x2b   : > { %s1597_s14 = smov 64   ;;  %s1598_s17 = smov 4  }
  0x2c   : > { %1378 = dma.hbm_to_vmem [thread:$0]  (!%p1707_p12), %s1984_s4, 256, %s229_s15, [#allocation3], %s1597_s14, %s1597_s14, %s1598_s17  }
  0x2d   : > { %s1495_s23 = scalar_lea.hbm %s1986_s6, 128 }
  0x2e   : > { %p1496_p13 = scmp.ne.s32.totalorder %s1986_s6, %s1495_s23  ;;  %p1502_p9 = scmp.lt.u32.totalorder %s1495_s23, %s1986_s6 }
  0x30   : > { %p1498_p5 = pnand %p1496_p13, %p1469_p0 }
  0x32   : > { %p1499_p6 = pneg %p1498_p5 }
  0x34   : > { %p1504_p10 = pnand %p1502_p9, %p1499_p6 }
  0x36   : > { %1507 = shalt.err (!%p1504_p10)
}
  0x37   : > { %s1508_s15 = scalar_lea.vmem %s1711_s18, 128  ;;  %p1516_p4 = scmp.lt.s32.totalorder %s1711_s18, %s1711_s18 }
  0x38   : > { %p1509_p1 = scmp.ne.s32.totalorder %s1711_s18, %s1508_s15  ;;  %p1517_p7 = scmp.lt.s32.totalorder %s1508_s15, %s1508_s15 }
  0x3a   : > { %p1511_p2 = pnand %p1509_p1, %p1469_p0  ;;  %p1518_p8 = por %p1517_p7, %p1516_p4 }
  0x3c   : > { %p1512_p3 = pneg %p1511_p2 }
  0x3e   : > { %p1519_p11 = pnand %p1518_p8, %p1512_p3 }
  0x40   : > { %1522 = shalt.err (!%p1519_p11)
}
  0x41   : > { %1381 = dma.hbm_to_vmem [thread:$0]  (!%p1707_p12), %s1986_s6, 128, %s1711_s18, [#allocation6]  }
  0x42   : > { %p1996_p13 = scmp.ne.s32.totalorder %s1994_s13, 0 }
  0x43   : > { %p1997_p5 = scmp.eq.s32.totalorder (!%p1996_p13), %s1671_s28, 0 }
  0x44   : > { %271 = sbr.rel (%p1996_p13) target bundleno = 2704 (0xa90), region = 48 }
  0x4b   : > { %1568 = dma.done.wait (%p1997_p5), [#allocation3], 256   ;;  %p1998_p0 = pmov %p1997_p5 }
  0x4d   : > { %1570 = vsyncadd (%p1998_p0), [#allocation3], 4294967040  ;;  %p1999_p6 = pmov %p1998_p0 }
  0x4e   : > { %p2000_p9 = pmov %p1998_p0 }
  0x4f   : > { %1572 = dma.done.wait (%p1999_p6), [#allocation6], 128  }
  0x50   : > { %1574 = vsyncadd (%p2000_p9), [#allocation6], 4294967168  ;;  %p309_p10 = scmp.lt.s32.totalorder %s1671_s28, 1  ;;  %vm319_vm0 = vcmask 261120   ;;  %v1437_v7 = vld [vmem:[%s1982_s2] sm:$0xff]   ;;  %v1599_v8 = vmov 0.0   ;;  %v334_v12 = vlaneseq }
  0x51   : > { %1281 = vmatprep.subr.bf16.mxu0 %v1599_v8  ;;  %vm1600_vm1 = vmmov 0   ;;  %v1438_v9 = vld [vmem:[%s1982_s2 + $0x8] sm:$0xff]   ;;  %1289 = vmatprep.subr.bf16.mxu1 %v1599_v8  ;;  %v1801_v16 = vld [vmem:[#allocation5] sm:$0xff]  ;;  %s1601_s29 = smov 104   ;;  %s1602_s8 = smov 120   ;;  %vm426_vm2 = vcmask 64512  }
  0x52   : > { %s1772_s16 = scalar_select %p309_p10, %s1671_s28, 1  ;;  %1285 = vmatprep.mubr.msk.bf16.mxu0 %vm1600_vm1, %v1599_v8  ;;  %1282 = vmatpush3.bf16.msra.mxu0 %v1437_v7  ;;  %v1798_v14 = vshrl.u32 %v334_v12, 7  ;;  %vm670_vm3 = vcmask 1043456   ;;  %vm871_vm4 = vcmask 130048   ;;  %vm873_vm5 = vcmask 195584  }
  0x53   : > { %1283 = vmatprep.subr.bf16.mxu0 %v1599_v8  ;;  %1291 = vmatprep.mubr.msk.bf16.mxu1 %vm1600_vm1, %v1599_v8  ;;  %s1603_s9 = smov 112   ;;  %s1604_s15 = smov 96   ;;  %vm1065_vm6 = vcmask 523264  }
  0x54   : > { %s1224_s13 = sshll.u32 %s1772_s16, 3  ;;  %v336_v15 = vsub.s32 0, %v1798_v14  ;;  %v341_v17 = vsub.s32 1, %v1798_v14  ;;  %v351_v25 = vsub.s32 6, %v1798_v14  ;;  %s1606_s21 = smov 8  }
  0x55   : > { %s312_s19 = scalar_lea.vmem %s1980_s0, %s1224_s13  ;;  %s315_s13 = scalar_lea.vmem %s1981_s1, %s1772_s16 }
  0x56   : > { %v1778_v0 = vld [vmem:[%s312_s19] sm:$0xff]  ;;  %1284 = vmatpush3.bf16.msra.mxu0 %v1438_v9  ;;  %v337_v18 = vrot.slane %v1801_v16, %v336_v15  ;;  %v342_v21 = vrot.slane %v1801_v16, %v341_v17  ;;  %v352_v26 = vrot.slane %v1801_v16, %v351_v25  ;;  %s1605_s16 = smov 64   ;;  %s1607_s22 = smov 16  }
  0x57   : > { %v320_v1 = vsel %vm319_vm0, %v1778_v0, 0.0  ;;  %1295 = vmatprep.subr.bf16.mxu0 %v1599_v8  ;;  %v416_v44 = vld [vmem:[%s315_s13] sm:$0x1]  ;;  %s1608_s23 = smov 24   ;;  %s306_s18 = sand.u32 1, %s1585_s25  }
  0x58   : > { %321 = vadd.xlane.f32.xlu0 %v320_v1  ;;  %v417_v45 = vmul.f32 -1e+09, %v416_v44  ;;  %s1223_s17 = sshll.u32 %s306_s18, 3  ;;  %s1248_s19 = sshll.u32 %s1671_s28, 7 }
  0x59   : > { %s308_s20 = scalar_lea.vmem [#allocation7], %s1223_s17  ;;  %s1112_s28 = scalar_lea.sflag [#allocation4], %s306_s18 }
  0x5a   : > { %v422_v46 = vrot.slane %v417_v45, %v336_v15  ;;  %p2001_p1 = scmp.ne.s32.totalorder %s1992_s11, 0 }
  0xe5   : > { %v322_v2 = vpop.xlane.xlu0 %321 }
  0xe6   : > { %v324_v3 = vmul.f32 0.03125, %v322_v2 }
  0xe8   : > { %v325_v4 = vsub.f32 %v1778_v0, %v324_v3 }
  0xea   : > { %v326_v5 = vmul.f32 %v325_v4, %v325_v4 }
  0xec   : > { %v327_v6 = vsel %vm319_vm0, %v326_v5, 0.0 }
  0xed   : > { %328 = vadd.xlane.f32.xlu0 %v327_v6 }
 0x17a   : > { %v329_v10 = vpop.xlane.xlu0 %328 }
 0x17b   : > { %v330_v11 = vmul.f32 0.03125, %v329_v10 }
 0x17d   : > { %v331_v13 = vadd.f32 1e-06, %v330_v11 }
 0x17f   : > { %1447 = vrsqrt.f32 %v331_v13 }
 0x189   : > { %v1448_v19 = vpop.eup %1447 }
 0x18a   : > { %v333_v20 = vmul.f32 %v1448_v19, %v325_v4 }
 0x18c   : > { %v338_v22 = vmul.f32 %v337_v18, %v333_v20 }
 0x18e   : > { %v343_v23 = vadd.f32 %v342_v21, %v338_v22 }
 0x190   : > { %v344_v24 = vpack.c.bf16 %v343_v23, %v343_v23 }
 0x192   : > { %1286 = vmatmul.mubr.msk.bf16.vlgmr.msra.gmra.mrb[0].mxu0 %vm319_vm0, %v344_v24 }
 0x193   : > { %1297 = vmatprep.mubr.msk.bf16.mxu0 %vm1600_vm1, %v1599_v8 }
 0x265   : > { %v402_v27 = vpop.f32.mrb[0].mxu0 }
 0x266   : > { %v403_v28 = vadd.f32 %v402_v27, %v352_v26  ;;  %v1287_v29 = vpop.f32.mrb[1].mxu0 }
 0x267   : > { %v405_v30 = vpop.f32.mrb[2].mxu0 }
 0x268   : > { %v1811_v31 = vpack.c.bf16 %v403_v28, %v403_v28  ;;  %v1288_v32 = vpop.f32.mrb[3].mxu0 }
 0x26a   : > { %414 = vrot.lane.b32.xlu0 %v1811_v31, %s1601_s29  ;;  %410 = vrot.lane.b32.xlu1 %v1811_v31, %s1602_s8  ;;  %s1937_s29 = scalar_lea.hbm %s1987_s7, %s1248_s19 }
 0x26e   : > { %412 = vrot.lane.b32.xlu1 %v1811_v31, %s1603_s9  ;;  %s1609_s9 = smov [#allocation7]  }
 0x272   : > { %424 = vrot.lane.b32.xlu1 %v1811_v31, %s1604_s15 }
 0x2dc   : > { %v1817_v33 = vpop.permute.xlu1 %410  ;;  %v1823_v35 = vpop.permute.xlu0 %414 }
 0x2dd   : > { %473 = vrot.lane.b32.xlu1 %v1817_v33, %s1604_s15 }
 0x2e0   : > { %v1820_v34 = vpop.permute.xlu1 %412 }
 0x2e1   : > { %521 = vrot.lane.b32.xlu1 %v1820_v34, %s1604_s15 }
 0x2e4   : > { %v425_v36 = vpop.permute.xlu1 %424 }
 0x2e5   : > { %569 = vrot.lane.b32.xlu1 %v1823_v35, %s1604_s15  ;;  %v431_v37 = vsel %vm426_vm2, %v425_v36, 0  ;;  %s1527_s15 = sshll.u32 %s1609_s9, 4  ;;  %s1528_s15 = int_to_ptr.vmem [resolvable:$false] %s1527_s15 }
 0x2e6   : > { %1290 = vmatpush3.bf16.xpose.msra.mxu1 %v431_v37  ;;  %s1529_s10 = scalar_lea.vmem %s1528_s15, 256 }
 0x2e7   : > { %1301 = vmatprep.subr.bf16.mxu1 %v1599_v8 }
 0x2ed   : > { %1292 = vmatmul.mubr.msk.bf16.vlgmr.msra.gmra.mrb[0].mxu1 %vm426_vm2, %v1811_v31 }
 0x2ee   : > { %1303 = vmatprep.mubr.msk.bf16.mxu1 %vm1600_vm1, %v1599_v8 }
 0x34f   : > { %v474_v38 = vpop.permute.xlu1 %473 }
 0x350   : > { %v479_v39 = vsel %vm426_vm2, %v474_v38, 0 }
 0x351   : > { %1296 = vmatpush3.bf16.xpose.msra.mxu0 %v479_v39 }
 0x352   : > { %1307 = vmatprep.subr.bf16.mxu0 %v1599_v8 }
 0x353   : > { %v522_v40 = vpop.permute.xlu1 %521 }
 0x354   : > { %v527_v41 = vsel %vm426_vm2, %v522_v40, 0 }
 0x355   : > { %1302 = vmatpush3.bf16.xpose.msra.mxu1 %v527_v41 }
 0x356   : > { %1313 = vmatprep.subr.bf16.mxu1 %v1599_v8 }
 0x357   : > { %v570_v42 = vpop.permute.xlu1 %569 }
 0x358   : > { %v575_v43 = vsel %vm426_vm2, %v570_v42, 0  ;;  %1298 = vmatmul.mubr.msk.bf16.vlgmr.msra.gmra.mrb[4].mxu0 %vm426_vm2, %v1817_v33 }
 0x359   : > { %1308 = vmatpush3.bf16.xpose.msra.mxu0 %v575_v43  ;;  %1309 = vmatprep.mubr.msk.bf16.mxu0 %vm1600_vm1, %v1599_v8 }
 0x35a   : > { %1319 = vmatprep.subr.bf16.mxu0 %v1599_v8 }
 0x35c   : > { %1304 = vmatmul.mubr.msk.bf16.vlgmr.msra.gmra.mrb[4].mxu1 %vm426_vm2, %v1820_v34 }
 0x35d   : > { %1315 = vmatprep.mubr.msk.bf16.mxu1 %vm1600_vm1, %v1599_v8 }
 0x360   : > { %1310 = vmatmul.mubr.msk.bf16.vlgmr.msra.gmra.mrb[8].mxu0 %vm426_vm2, %v1823_v35 }
 0x361   : > { %1321 = vmatprep.mubr.msk.bf16.mxu0 %vm1600_vm1, %v1599_v8 }
 0x3c0   : > { %v467_v47 = vpop.f32.mrb[0].mxu1 }
 0x3c1   : > { %v468_v48 = vadd.f32 %v467_v47, %v422_v46  ;;  %v1293_v49 = vpop.f32.mrb[1].mxu1 }
 0x3c2   : > { %v470_v50 = vpop.f32.mrb[2].mxu1 }
 0x3c3   : > { %v1294_v51 = vpop.f32.mrb[3].mxu1  ;;  %v617_v52 = vsel %vm426_vm2, %v468_v48, -inf }
 0x3c4   : > { %618 = vmax.xlane.f32.xlu1 %v617_v52 }
 0x42b   : > { %v515_v53 = vpop.f32.mrb[4].mxu0 }
 0x42c   : > { %v516_v54 = vadd.f32 %v515_v53, %v422_v46  ;;  %v1299_v55 = vpop.f32.mrb[5].mxu0 }
 0x42d   : > { %v518_v56 = vpop.f32.mrb[6].mxu0 }
 0x42e   : > { %v1300_v57 = vpop.f32.mrb[7].mxu0  ;;  %v620_v58 = vsel %vm426_vm2, %v516_v54, -inf }
 0x42f   : > { %v563_v59 = vpop.f32.mrb[4].mxu1  ;;  %621 = vmax.xlane.f32.xlu0 %v620_v58 }
 0x430   : > { %v564_v60 = vadd.f32 %v563_v59, %v422_v46  ;;  %v1305_v61 = vpop.f32.mrb[5].mxu1  ;;  %v1439_v59 = vld [vmem:[%s1983_s3] sm:$0xff]  }
 0x431   : > { %v566_v62 = vpop.f32.mrb[6].mxu1 }
 0x432   : > { %v1306_v63 = vpop.f32.mrb[7].mxu1  ;;  %v623_v1 = vsel %vm426_vm2, %v564_v60, -inf }
 0x433   : > { %624 = vmax.xlane.f32.xlu1 %v623_v1  ;;  %v611_v2 = vpop.f32.mrb[8].mxu0 }
 0x434   : > { %v612_v3 = vadd.f32 %v611_v2, %v422_v46  ;;  %v1311_v4 = vpop.f32.mrb[9].mxu0 }
 0x435   : > { %v614_v5 = vpop.f32.mrb[10].mxu0 }
 0x436   : > { %v1312_v6 = vpop.f32.mrb[11].mxu0  ;;  %v626_v7 = vsel %vm426_vm2, %v612_v3, -inf }
 0x437   : > { %627 = vmax.xlane.f32.xlu0 %v626_v7 }
 0x444   : > { %665 = vrot.lane.b32.xlu1 %v1811_v31, %s1605_s16 }
 0x451   : > { %v619_v9 = vpop.xlane.xlu1 %618 }
 0x452   : > { %v629_v10 = vsub.f32 %v468_v48, %v619_v9 }
 0x454   : > { %v633_v11 = vmul.f32 1.442695, %v629_v10 }
 0x456   : > { %1449 = vpow2.f32 %v633_v11 }
 0x460   : > { %v1450_v12 = vpop.eup %1449 }
 0x461   : > { %v641_v13 = vsel %vm426_vm2, %v1450_v12, 0.0 }
 0x468   : > { %642 = vadd.xlane.f32.xlu1 %v641_v13 }
 0x4bc   : > { %v622_v15 = vpop.xlane.xlu0 %621 }
 0x4bd   : > { %v630_v17 = vsub.f32 %v516_v54, %v622_v15 }
 0x4bf   : > { %v635_v18 = vmul.f32 1.442695, %v630_v17 }
 0x4c0   : > { %v625_v19 = vpop.xlane.xlu1 %624 }
 0x4c1   : > { %1451 = vpow2.f32 %v635_v18  ;;  %v631_v20 = vsub.f32 %v564_v60, %v625_v19  ;;  %v1440_v60 = vld [vmem:[%s1983_s3 + $0x8] sm:$0xff]  }
 0x4c3   : > { %v637_v21 = vmul.f32 1.442695, %v631_v20  ;;  %v882_v20 = vsub.s32 4, %v1798_v14 }
 0x4c4   : > { %v666_v22 = vpop.permute.xlu1 %665  ;;  %v628_v23 = vpop.xlane.xlu0 %627 }
 0x4c5   : > { %1453 = vpow2.f32 %v637_v21  ;;  %v672_v24 = vsel %vm670_vm3, %v666_v22, 0  ;;  %v632_v25 = vsub.f32 %v612_v3, %v628_v23  ;;  %v883_v21 = vrot.slane %v1801_v16, %v882_v20 }
 0x4c6   : > { %1314 = vmatpush3.bf16.msra.mxu1 %v672_v24 }
 0x4c7   : > { %v639_v26 = vmul.f32 1.442695, %v632_v25  ;;  %1325 = vmatprep.subr.bf16.mxu1 %v1599_v8 }
 0x4c9   : > { %1455 = vpow2.f32 %v639_v26 }
 0x4cb   : > { %v1452_v27 = vpop.eup %1451 }
 0x4cc   : > { %v644_v28 = vsel %vm426_vm2, %v1452_v27, 0.0 }
 0x4cd   : > { %645 = vadd.xlane.f32.xlu0 %v644_v28 }
 0x4cf   : > { %v1454_v29 = vpop.eup %1453 }
 0x4d0   : > { %v647_v30 = vsel %vm426_vm2, %v1454_v29, 0.0 }
 0x4d1   : > { %648 = vadd.xlane.f32.xlu1 %v647_v30 }
 0x4d3   : > { %v1456_v31 = vpop.eup %1455 }
 0x4d4   : > { %v650_v32 = vsel %vm426_vm2, %v1456_v31, 0.0 }
 0x4d5   : > { %651 = vadd.xlane.f32.xlu0 %v650_v32 }
 0x4e2   : > { %762 = vrot.lane.b32.xlu1 %v1820_v34, %s1605_s16 }
 0x4e6   : > { %810 = vrot.lane.b32.xlu1 %v1823_v35, %s1605_s16 }
 0x4eb   : > { %714 = vrot.lane.b32.xlu0 %v1817_v33, %s1605_s16 }
 0x4f5   : > { %v643_v36 = vpop.xlane.xlu1 %642 }
 0x4f6   : > { %1457 = vrcp.f32 %v643_v36 }
 0x500   : > { %v1458_v37 = vpop.eup %1457 }
 0x501   : > { %v657_v38 = vmul.f32 %v1458_v37, %v1450_v12  ;;  %v1441_v37 = vld [vmem:[#allocation2] sm:$0xff]  }
 0x503   : > { %v661_v39 = vpack.c.bf16 %v657_v38, %v657_v38  ;;  %v1442_v38 = vld [vmem:[#allocation2 + $0x8] sm:$0xff]  }
 0x505   : > { %1316 = vmatmul.mubr.msk.bf16.vlgmr.msra.gmra.mrb[8].mxu1 %vm426_vm2, %v661_v39  ;;  %v1444_v39 = vld [vmem:[%s1985_s5 + $0x8] sm:$0xff]  }
 0x506   : > { %1327 = vmatprep.mubr.msk.bf16.mxu1 %vm1600_vm1, %v1599_v8 }
 0x55a   : > { %v646_v40 = vpop.xlane.xlu0 %645 }
 0x55b   : > { %1459 = vrcp.f32 %v646_v40 }
 0x55e   : > { %v649_v41 = vpop.xlane.xlu1 %648 }
 0x55f   : > { %1461 = vrcp.f32 %v649_v41 }
 0x562   : > { %v763_v34 = vpop.permute.xlu1 %762  ;;  %v652_v42 = vpop.xlane.xlu0 %651 }
 0x563   : > { %v768_v35 = vsel %vm670_vm3, %v763_v34, 0  ;;  %1463 = vrcp.f32 %v652_v42  ;;  %v955_v42 = vsub.s32 2, %v1798_v14 }
 0x564   : > { %1326 = vmatpush3.bf16.msra.mxu1 %v768_v35  ;;  %v960_v35 = vsub.s32 3, %v1798_v14 }
 0x565   : > { %v1460_v33 = vpop.eup %1459  ;;  %1337 = vmatprep.subr.bf16.mxu1 %v1599_v8 }
 0x566   : > { %v658_v43 = vmul.f32 %v1460_v33, %v1452_v27  ;;  %v715_v44 = vpop.permute.xlu0 %714  ;;  %v811_v46 = vpop.permute.xlu1 %810  ;;  %v956_v33 = vrot.slane %v1801_v16, %v955_v42 }
 0x567   : > { %v720_v45 = vsel %vm670_vm3, %v715_v44, 0  ;;  %v816_v50 = vsel %vm670_vm3, %v811_v46, 0 }
 0x568   : > { %1320 = vmatpush3.bf16.msra.mxu0 %v720_v45  ;;  %v662_v47 = vpack.c.bf16 %v658_v43, %v658_v43  ;;  %v961_v45 = vrot.slane %v1801_v16, %v960_v35 }
 0x569   : > { %v1462_v48 = vpop.eup %1461  ;;  %1331 = vmatprep.subr.bf16.mxu0 %v1599_v8 }
 0x56a   : > { %v659_v49 = vmul.f32 %v1462_v48, %v1454_v29 }
 0x56b   : > { %1322 = vmatmul.mubr.msk.bf16.vlgmr.msra.gmra.mrb[12].mxu0 %vm426_vm2, %v662_v47 }
 0x56c   : > { %1332 = vmatpush3.bf16.msra.mxu0 %v816_v50  ;;  %v663_v51 = vpack.c.bf16 %v659_v49, %v659_v49  ;;  %1333 = vmatprep.mubr.msk.bf16.mxu0 %vm1600_vm1, %v1599_v8  ;;  %v1445_v49 = vld [vmem:[%s1985_s5 + $0x10] sm:$0xff]   ;;  %v1446_v50 = vld [vmem:[%s1985_s5 + $0x18] sm:$0xff]  }
 0x56d   : > { %v1464_v52 = vpop.eup %1463  ;;  %1345 = vmatprep.subr.bf16.mxu0 %v1599_v8 }
 0x56e   : > { %v660_v53 = vmul.f32 %v1464_v52, %v1456_v31  ;;  %1328 = vmatmul.mubr.msk.bf16.vlgmr.msra.gmra.mrb[12].mxu1 %vm426_vm2, %v663_v51  ;;  %v970_v51 = vsub.s32 7, %v1798_v14 }
 0x56f   : > { %1341 = vmatprep.mubr.msk.bf16.mxu1 %vm1600_vm1, %v1599_v8  ;;  %1338 = vmatpush3.bf16.msra.mxu1 %v1439_v59 }
 0x570   : > { %v664_v54 = vpack.c.bf16 %v660_v53, %v660_v53  ;;  %1339 = vmatprep.subr.bf16.mxu1 %v1599_v8  ;;  %v971_v52 = vrot.slane %v1801_v16, %v970_v51 }
 0x573   : > { %1334 = vmatmul.mubr.msk.bf16.vlgmr.msra.gmra.mrb[16].mxu0 %vm426_vm2, %v664_v54  ;;  %1340 = vmatpush3.bf16.msra.mxu1 %v1440_v60 }
 0x574   : > { %1349 = vmatprep.mubr.msk.bf16.mxu0 %vm1600_vm1, %v1599_v8  ;;  %1353 = vmatprep.subr.bf16.mxu1 %v1599_v8 }
 0x575   : > { %1346 = vmatpush3.bf16.msra.mxu0 %v1441_v37 }
 0x576   : > { %1347 = vmatprep.subr.bf16.mxu0 %v1599_v8 }
 0x579   : > { %1348 = vmatpush3.bf16.msra.mxu0 %v1442_v38 }
 0x5d8   : > { %v708_v55 = vpop.f32.mrb[8].mxu1 }
 0x5d9   : > { %v1317_v56 = vpop.f32.mrb[9].mxu1 }
 0x5da   : > { %v711_v57 = vpop.f32.mrb[10].mxu1 }
 0x5db   : > { %v1318_v58 = vpop.f32.mrb[11].mxu1 }
 0x63e   : > { %v756_v61 = vpop.f32.mrb[12].mxu0 }
 0x63f   : > { %859 = vrot.lane.b32.xlu0 %v756_v61, %s1606_s21  ;;  %v1323_v62 = vpop.f32.mrb[13].mxu0  ;;  %s1125_s21 = sshll.u32 %s308_s20, 4  ;;  %s1939_s21 = int_to_ptr.vmem [resolvable:$true] %s1125_s21 }
 0x640   : > { %v759_v63 = vpop.f32.mrb[14].mxu0  ;;  %s1523_s8 = scalar_lea.vmem %s1939_s21, 128  ;;  %p1530_p4 = scmp.lt.s32.totalorder %s1939_s21, %s1528_s15 }
 0x641   : > { %v1324_v1 = vpop.f32.mrb[15].mxu0  ;;  %v804_v2 = vpop.f32.mrb[12].mxu1  ;;  %p1524_p12 = scmp.ne.s32.totalorder %s1939_s21, %s1523_s8  ;;  %p1531_p7 = scmp.lt.s32.totalorder %s1529_s10, %s1523_s8 }
 0x642   : > { %863 = vrot.lane.b32.xlu1 %v804_v2, %s1607_s22  ;;  %v1329_v3 = vpop.f32.mrb[13].mxu1 }
 0x643   : > { %v807_v4 = vpop.f32.mrb[14].mxu1  ;;  %p1525_p2 = pnand %p1524_p12, %p2001_p1  ;;  %p1532_p8 = por %p1531_p7, %p1530_p4 }
 0x644   : > { %v1330_v5 = vpop.f32.mrb[15].mxu1 }
 0x645   : > { %p1526_p3 = pneg %p1525_p2 }
 0x646   : > { %v852_v6 = vpop.f32.mrb[16].mxu0 }
 0x647   : > { %867 = vrot.lane.b32.xlu0 %v852_v6, %s1608_s23  ;;  %v1335_v7 = vpop.f32.mrb[17].mxu0  ;;  %p1533_p11 = pnand %p1532_p8, %p1526_p3 }
 0x648   : > { %v855_v9 = vpop.f32.mrb[18].mxu0 }
 0x649   : > { %v1336_v10 = vpop.f32.mrb[19].mxu0 }
 0x6b1   : > { %v860_v11 = vpop.permute.xlu0 %859 }
 0x6b2   : > { %v870_v13 = vsel %vm426_vm2, %v708_v55, %v860_v11 }
 0x6b4   : > { %v864_v12 = vpop.permute.xlu1 %863 }
 0x6b5   : > { %v872_v15 = vsel %vm871_vm4, %v870_v13, %v864_v12 }
 0x6b9   : > { %v868_v17 = vpop.permute.xlu0 %867 }
 0x6ba   : > { %v874_v18 = vsel %vm873_vm5, %v872_v15, %v868_v17 }
 0x6bb   : > { %v875_v19 = vpack.c.bf16 %v874_v18, %v874_v18 }
 0x6bd   : > { %1342 = vmatmul.mubr.msk.bf16.vlgmr.msra.gmra.mrb[16].mxu1 %vm319_vm0, %v875_v19 }
 0x6be   : > { %1361 = vmatprep.mubr.msk.bf16.mxu1 %vm1600_vm1, %v1599_v8 }
 0x790   : > { %v933_v22 = vpop.f32.mrb[16].mxu1 }
 0x791   : > { %v934_v23 = vadd.f32 %v933_v22, %v883_v21  ;;  %v1343_v24 = vpop.f32.mrb[17].mxu1 }
 0x792   : > { %v936_v25 = vpop.f32.mrb[18].mxu1 }
 0x793   : > { %v939_v26 = vadd.f32 %v934_v23, %v1778_v0  ;;  %v1344_v27 = vpop.f32.mrb[19].mxu1  ;;  %v1443_v0 = vld [vmem:[%s1985_s5] sm:$0xff]  }
 0x794   : > { %1354 = vmatpush3.bf16.msra.mxu1 %v1443_v0 }
 0x795   : > { %v940_v28 = vsel %vm319_vm0, %v939_v26, 0.0  ;;  %1355 = vmatprep.subr.bf16.mxu1 %v1599_v8 }
 0x796   : > { %941 = vadd.xlane.f32.xlu1 %v940_v28 }
 0x798   : > { %1356 = vmatpush3.bf16.msra.mxu1 %v1444_v39 }
 0x799   : > { %1357 = vmatprep.subr.bf16.mxu1 %v1599_v8 }
 0x79c   : > { %1358 = vmatpush3.bf16.msra.mxu1 %v1445_v49 }
 0x79d   : > { %1359 = vmatprep.subr.bf16.mxu1 %v1599_v8  ;;  %v1039_v8 = vsub.s32 5, %v1798_v14 }
 0x79f   : > { %v1040_v60 = vrot.slane %v1801_v16, %v1039_v8 }
 0x7a0   : > { %1360 = vmatpush3.bf16.msra.mxu1 %v1446_v50 }
 0x823   : > { %v942_v29 = vpop.xlane.xlu1 %941 }
 0x824   : > { %v943_v30 = vmul.f32 0.03125, %v942_v29 }
 0x826   : > { %v944_v31 = vsub.f32 %v939_v26, %v943_v30 }
 0x828   : > { %v945_v32 = vmul.f32 %v944_v31, %v944_v31 }
 0x82a   : > { %v946_v36 = vsel %vm319_vm0, %v945_v32, 0.0 }
 0x82b   : > { %947 = vadd.xlane.f32.xlu0 %v946_v36 }
 0x8b8   : > { %v948_v40 = vpop.xlane.xlu0 %947 }
 0x8b9   : > { %v949_v41 = vmul.f32 0.03125, %v948_v40 }
 0x8bb   : > { %v950_v34 = vadd.f32 1e-06, %v949_v41 }
 0x8bd   : > { %1465 = vrsqrt.f32 %v950_v34 }
 0x8c7   : > { %v1466_v43 = vpop.eup %1465 }
 0x8c8   : > { %v952_v44 = vmul.f32 %v1466_v43, %v944_v31 }
 0x8ca   : > { %v957_v46 = vmul.f32 %v956_v33, %v952_v44 }
 0x8cc   : > { %v962_v47 = vadd.f32 %v961_v45, %v957_v46 }
 0x8ce   : > { %v963_v48 = vpack.c.bf16 %v962_v47, %v962_v47 }
 0x8d0   : > { %1350 = vmatmul.mubr.msk.bf16.vlgmr.msra.gmra.mrb[20].mxu0 %vm319_vm0, %v963_v48 }
 0x9a3   : > { %v1021_v53 = vpop.f32.mrb[20].mxu0 }
 0x9a4   : > { %v1022_v54 = vadd.f32 %v1021_v53, %v971_v52  ;;  %v1351_v55 = vpop.f32.mrb[21].mxu0 }
 0x9a5   : > { %v1024_v56 = vpop.f32.mrb[22].mxu0 }
 0x9a6   : > { %v1027_v57 = vmax.f32 %v1022_v54, 0.0  ;;  %v1352_v58 = vpop.f32.mrb[23].mxu0 }
 0x9a8   : > { %v1028_v59 = vpack.c.bf16 %v1027_v57, %v1027_v57 }
 0x9aa   : > { %1362 = vmatmul.mubr.msk.bf16.vlgmr.msra.gmra.mrb[20].mxu1 %vm1065_vm6, %v1028_v59 }
 0xa7d   : > { %v1103_v61 = vpop.f32.mrb[20].mxu1 }
 0xa7e   : > { %v1104_v62 = vadd.f32 %v1103_v61, %v1040_v60  ;;  %v1363_v63 = vpop.f32.mrb[21].mxu1 }
 0xa7f   : > { %v1106_v1 = vpop.f32.mrb[22].mxu1 }
 0xa80   : > { %v1109_v2 = vadd.f32 %v1104_v62, %v939_v26  ;;  %v1364_v3 = vpop.f32.mrb[23].mxu1 }
 0xa82   : > { %1110 = vst.msk [vmem:[%s308_s20] sm:$0xff] %vm319_vm0, %v1109_v2 }
 0xa83   : > { %1536 = shalt.err (!%p1533_p11)
}
 0xa84   : > { %s1537_s14 = scalar_lea.hbm %s1937_s29, 128  ;;  %s1541_s18 = scalar_lea.hbm %s1987_s7, 256 }
 0xa85   : > { %p1538_p13 = scmp.ne.s32.totalorder %s1937_s29, %s1537_s14  ;;  %p1542_p6 = scmp.lt.u32.totalorder %s1937_s29, %s1987_s7 }
 0xa86   : > { %p1543_p9 = scmp.lt.u32.totalorder %s1541_s18, %s1537_s14  ;;  %p1545_p12 = scmp.lt.u32.totalorder %s1537_s14, %s1937_s29 }
 0xa87   : > { %p1539_p5 = pnand %p1538_p13, %p2001_p1 }
 0xa88   : > { %p1544_p10 = por %p1543_p9, %p1542_p6 }
 0xa89   : > { %p1540_p0 = pneg %p1539_p5 }
 0xa8a   : > { %p1546_p2 = por %p1545_p12, %p1544_p10 }
 0xa8c   : > { %p1547_p3 = pnand %p1546_p2, %p1540_p0 }
 0xa8e   : > { %1550 = shalt.err (!%p1547_p3)
}
 0xa8f   : > { %1373 = dma.vmem_to_hbm [thread:$0]  (%p2001_p1), %s1939_s21, 128, %s1937_s29, %s1112_s28  }
 0xa90 PF: > { %p1390_p4 = scmp.ge.s32.totalorder %s1593_s27, 2  ;;  %s1137_s20 = sand.u32 1, %s1581_s24  }
 0xa91   : > { %p2002_p7 = scmp.ne.s32.totalorder %s1993_s12, 0  ;;  %s1138_s22 = scalar_lea.sflag [#allocation4], %s1137_s20 }
 0xa93   : > { %p1383_p8 = pnand %p1390_p4, %p2002_p7 }
 0xa95   : > { %1576 = dma.done.wait (!%p1383_p8), %s1138_s22, 128  }
 0xa96   : > { %1578 = vsyncadd (!%p1383_p8), %s1138_s22, 4294967168  ;;  %s2003_s23 = sld [smem:[#allocation11_spill]]  ;;  %p19_p11 = scmp.ge.s32.totalorder %s1675_s30, 4  }
 0xa97   : > { %s2004_s24 = smov %s1585_s25  ;;  %s2005_s25 = smov %s1589_s26 }
 0xa98   : > { %s2007_s27 = smov %s1675_s30  ;;  %21 = sbr.rel (!%p19_p11) target bundleno = 5 (0x5), region = 95 }
 0xa9c   : > { %s2006_s26 = smov %s2003_s23 }
 0xa9f   :  { %1143 = vsyncpa [#allocation3], 1 }
 0xaa0   :  { %1145 = vsyncpa [#allocation3 + $0x1], 1 }
 0xaa1   :  { %1146 = vsyncpa [#allocation6], 1 }
 0xaa2   :  { %1147 = vsyncpa [#allocation4], 1 }
 0xaa3   :  { %1149 = vsyncpa [#allocation4 + $0x1], 1 }

// kernel: tpu_custom_call.1
= control target key start
LH: loop header
LB: loop body
LE: loop exit
PB: predicated region body
PF: predicated region fallthrough
CT: control target
= control target key end

     0   :  { %12 = vsyncpa [#allocation3], 0  ;;  %s1980_s0 = inlined_call_operand.vmem [shape: f32[16,32], index: 0, kind: input, shape index: {}]   ;;  %s1981_s1 = inlined_call_operand.vmem [shape: f32[2,1,8], index: 1, kind: input, shape index: {}]   ;;  %s1982_s2 = inlined_call_operand.vmem [shape: bf16[32,96], index: 2, kind: input, shape index: {}]   ;;  %s1983_s3 = inlined_call_operand.vmem [shape: bf16[32,32], index: 3, kind: input, shape index: {}]   ;;  %s1984_s4 = inlined_call_operand.hbm [shape: bf16[32,64], index: 4, kind: input, shape index: {}]   ;;  %s1985_s5 = inlined_call_operand.vmem [shape: bf16[64,32], index: 5, kind: input, shape index: {}]   ;;  %s1986_s6 = inlined_call_operand.hbm [shape: f32[8,96], index: 6, kind: input, shape index: {}]   ;;  %s1987_s7 = inlined_call_operand.hbm [shape: f32[16,32], index: 7, kind: output, shape index: {}]  }
   0x1   :  { %13 = vsyncpa [#allocation6], 0 }
   0x2   :  { %14 = vsyncpa [#allocation4], 0 }
   0x3   :  { %16 = vsyncpa [#allocation4 + $0x1], 0  ;;  %s1650_s24 = smov 0   ;;  %s1652_s25 = smov 0  }
   0x4   :  { %s1654_s26 = smov 0   ;;  %s1656_s27 = smov 0  }
   0x5 LB: > { %s1671_s28 = sadd.s32 4294967295, %s1593_s27   ;;  %s1215_s29 = sadd.s32 4294967294, %s1593_s27   ;;  %s1593_s27 = sphi %s1656_s27, %s2007_s27   ;;  %s1589_s26 = sphi %s1654_s26, %s2006_s26   ;;  %s1585_s25 = sphi %s1652_s25, %s2005_s25   ;;  %s1581_s24 = sphi %s1650_s24, %s2004_s24  }
   0x6   : > { %s1675_s30 = sadd.s32 1, %s1593_s27   ;;  %s186_s8 = sadd.s32 1, %s1589_s26 }
   0x7   : > { %s183_s9 = ssub.s32 %s1593_s27, %s1675_s30  ;;  %p196_p0 = scmp.ne.s32.totalorder %s1589_s26, %s1585_s25 }
   0x8   : > { %p184_p1 = scmp.eq.s32.totalorder %s183_s9, 0  ;;  %p197_p2 = scmp.eq.s32.totalorder %s1671_s28, 1 }
   0x9   : > { %p202_p3 = scmp.ne.s32.totalorder %s1585_s25, %s1581_s24  ;;  %p203_p4 = scmp.eq.s32.totalorder %s1215_s29, 1 }
   0xa   : > { %s1686_s10 = scalar_select %p184_p1, %s1589_s26, %s186_s8  }
   0xb   : > { %p1688_p5 = por %p197_p2, %p196_p0  ;;  %p1692_p6 = por %p203_p4, %p202_p3 }
   0xc   : > { %1991 = sst [smem:[#allocation11_spill]] %s1686_s10  ;;  %p1216_p7 = scmp.ge.s32.totalorder %s1593_s27, 1 }
   0xd   : > { %s1992_s11 = scalar_select %p1688_p5, 1, 0 }
   0xe   : > { %s1993_s12 = scalar_select %p1692_p6, 1, 0 }
   0xf   : > { %p210_p8 = scmp.lt.s32.totalorder %s1593_s27, 3  ;;  %p1988_p9 = scmp.eq.s32.totalorder %s1671_s28, 0 }
  0x10   : > { %s1595_s14 = smov [#allocation2]   ;;  %s1596_s17 = smov [#allocation5]  }
  0x11   : > { %p1699_p10 = pnand %p1216_p7, %p210_p8  ;;  %s228_s15 = sshll.u32 %s1595_s14, 4  ;;  %s229_s15 = int_to_ptr.vmem [resolvable:$true] %s228_s15 }
  0x12   : > { %s245_s18 = sshll.u32 %s1596_s17, 4  ;;  %s1467_s21 = scalar_lea.hbm %s1984_s4, 256  ;;  %s1711_s18 = int_to_ptr.vmem [resolvable:$true] %s245_s18 }
  0x13   : > { %s1994_s13 = scalar_select %p1699_p10, 1, 0 }
  0x14   : > { %p1375_p11 = pneg %p1699_p10  ;;  %p1468_p13 = scmp.ne.s32.totalorder %s1984_s4, %s1467_s21 }
  0x15   : > { %p1474_p3 = scmp.lt.u32.totalorder %s1467_s21, %s1984_s4 }
  0x16   : > { %p1707_p12 = pnand %p1988_p9, %p1375_p11 }
  0x18   : > { %p1469_p0 = pneg %p1707_p12 }
  0x1a   : > { %p1470_p1 = pnand %p1469_p0, %p1468_p13 }
  0x1c   : > { %p1471_p2 = pneg %p1470_p1 }
  0x1e   : > { %p1476_p4 = pnand %p1474_p3, %p1471_p2 }
  0x20   : > { %1479 = shalt.err (!%p1476_p4)
}
  0x21   : > { %s1480_s9 = scalar_lea.vmem %s229_s15, 256  ;;  %p1488_p9 = scmp.lt.s32.totalorder %s229_s15, %s229_s15 }
  0x22   : > { %p1481_p7 = scmp.ne.s32.totalorder %s229_s15, %s1480_s9  ;;  %p1489_p6 = scmp.lt.s32.totalorder %s1480_s9, %s1480_s9 }
  0x24   : > { %p1483_p8 = pnand %p1481_p7, %p1469_p0  ;;  %p1490_p5 = por %p1489_p6, %p1488_p9 }
  0x26   : > { %p1484_p11 = pneg %p1483_p8 }
  0x28   : > { %p1491_p10 = pnand %p1490_p5, %p1484_p11 }
  0x2a   : > { %1494 = shalt.err (!%p1491_p10)
}
  0x2b   : > { %s1597_s14 = smov 64   ;;  %s1598_s17 = smov 4  }
  0x2c   : > { %1378 = dma.hbm_to_vmem [thread:$0]  (!%p1707_p12), %s1984_s4, 256, %s229_s15, [#allocation3], %s1597_s14, %s1597_s14, %s1598_s17  }
  0x2d   : > { %s1495_s23 = scalar_lea.hbm %s1986_s6, 128 }
  0x2e   : > { %p1496_p13 = scmp.ne.s32.totalorder %s1986_s6, %s1495_s23  ;;  %p1502_p9 = scmp.lt.u32.totalorder %s1495_s23, %s1986_s6 }
  0x30   : > { %p1498_p5 = pnand %p1496_p13, %p1469_p0 }
  0x32   : > { %p1499_p6 = pneg %p1498_p5 }
  0x34   : > { %p1504_p10 = pnand %p1502_p9, %p1499_p6 }
  0x36   : > { %1507 = shalt.err (!%p1504_p10)
}
  0x37   : > { %s1508_s15 = scalar_lea.vmem %s1711_s18, 128  ;;  %p1516_p4 = scmp.lt.s32.totalorder %s1711_s18, %s1711_s18 }
  0x38   : > { %p1509_p1 = scmp.ne.s32.totalorder %s1711_s18, %s1508_s15  ;;  %p1517_p7 = scmp.lt.s32.totalorder %s1508_s15, %s1508_s15 }
  0x3a   : > { %p1511_p2 = pnand %p1509_p1, %p1469_p0  ;;  %p1518_p8 = por %p1517_p7, %p1516_p4 }
  0x3c   : > { %p1512_p3 = pneg %p1511_p2 }
  0x3e   : > { %p1519_p11 = pnand %p1518_p8, %p1512_p3 }
  0x40   : > { %1522 = shalt.err (!%p1519_p11)
}
  0x41   : > { %1381 = dma.hbm_to_vmem [thread:$0]  (!%p1707_p12), %s1986_s6, 128, %s1711_s18, [#allocation6]  }
  0x42   : > { %p1996_p13 = scmp.ne.s32.totalorder %s1994_s13, 0 }
  0x43   : > { %p1997_p5 = scmp.eq.s32.totalorder (!%p1996_p13), %s1671_s28, 0 }
  0x44   : > { %271 = sbr.rel (%p1996_p13) target bundleno = 2704 (0xa90), region = 48 }
  0x4b   : > { %1568 = dma.done.wait (%p1997_p5), [#allocation3], 256   ;;  %p1998_p0 = pmov %p1997_p5 }
  0x4d   : > { %1570 = vsyncadd (%p1998_p0), [#allocation3], 4294967040  ;;  %p1999_p6 = pmov %p1998_p0 }
  0x4e   : > { %p2000_p9 = pmov %p1998_p0 }
  0x4f   : > { %1572 = dma.done.wait (%p1999_p6), [#allocation6], 128  }
  0x50   : > { %1574 = vsyncadd (%p2000_p9), [#allocation6], 4294967168  ;;  %p309_p10 = scmp.lt.s32.totalorder %s1671_s28, 1  ;;  %vm319_vm0 = vcmask 261120   ;;  %v1437_v7 = vld [vmem:[%s1982_s2] sm:$0xff]   ;;  %v1599_v8 = vmov 0.0   ;;  %v334_v12 = vlaneseq }
  0x51   : > { %1281 = vmatprep.subr.bf16.mxu0 %v1599_v8  ;;  %vm1600_vm1 = vmmov 0   ;;  %v1438_v9 = vld [vmem:[%s1982_s2 + $0x8] sm:$0xff]   ;;  %1289 = vmatprep.subr.bf16.mxu1 %v1599_v8  ;;  %v1801_v16 = vld [vmem:[#allocation5] sm:$0xff]  ;;  %s1601_s29 = smov 104   ;;  %s1602_s8 = smov 120   ;;  %vm426_vm2 = vcmask 64512  }
  0x52   : > { %s1772_s16 = scalar_select %p309_p10, %s1671_s28, 1  ;;  %1285 = vmatprep.mubr.msk.bf16.mxu0 %vm1600_vm1, %v1599_v8  ;;  %1282 = vmatpush3.bf16.msra.mxu0 %v1437_v7  ;;  %v1798_v14 = vshrl.u32 %v334_v12, 7  ;;  %vm670_vm3 = vcmask 1043456   ;;  %vm871_vm4 = vcmask 130048   ;;  %vm873_vm5 = vcmask 195584  }
  0x53   : > { %1283 = vmatprep.subr.bf16.mxu0 %v1599_v8  ;;  %1291 = vmatprep.mubr.msk.bf16.mxu1 %vm1600_vm1, %v1599_v8  ;;  %s1603_s9 = smov 112   ;;  %s1604_s15 = smov 96   ;;  %vm1065_vm6 = vcmask 523264  }
  0x54   : > { %s1224_s13 = sshll.u32 %s1772_s16, 3  ;;  %v336_v15 = vsub.s32 0, %v1798_v14  ;;  %v341_v17 = vsub.s32 1, %v1798_v14  ;;  %v351_v25 = vsub.s32 6, %v1798_v14  ;;  %s1606_s21 = smov 8  }
  0x55   : > { %s312_s19 = scalar_lea.vmem %s1980_s0, %s1224_s13  ;;  %s315_s13 = scalar_lea.vmem %s1981_s1, %s1772_s16 }
  0x56   : > { %v1778_v0 = vld [vmem:[%s312_s19] sm:$0xff]  ;;  %1284 = vmatpush3.bf16.msra.mxu0 %v1438_v9  ;;  %v337_v18 = vrot.slane %v1801_v16, %v336_v15  ;;  %v342_v21 = vrot.slane %v1801_v16, %v341_v17  ;;  %v352_v26 = vrot.slane %v1801_v16, %v351_v25  ;;  %s1605_s16 = smov 64   ;;  %s1607_s22 = smov 16  }
  0x57   : > { %v320_v1 = vsel %vm319_vm0, %v1778_v0, 0.0  ;;  %1295 = vmatprep.subr.bf16.mxu0 %v1599_v8  ;;  %v416_v44 = vld [vmem:[%s315_s13] sm:$0x1]  ;;  %s1608_s23 = smov 24   ;;  %s306_s18 = sand.u32 1, %s1585_s25  }
  0x58   : > { %321 = vadd.xlane.f32.xlu0 %v320_v1  ;;  %v417_v45 = vmul.f32 -1e+09, %v416_v44  ;;  %s1223_s17 = sshll.u32 %s306_s18, 3  ;;  %s1248_s19 = sshll.u32 %s1671_s28, 7 }
  0x59   : > { %s308_s20 = scalar_lea.vmem [#allocation7], %s1223_s17  ;;  %s1112_s28 = scalar_lea.sflag [#allocation4], %s306_s18 }
  0x5a   : > { %v422_v46 = vrot.slane %v417_v45, %v336_v15  ;;  %p2001_p1 = scmp.ne.s32.totalorder %s1992_s11, 0 }
  0xe5   : > { %v322_v2 = vpop.xlane.xlu0 %321 }
  0xe6   : > { %v324_v3 = vmul.f32 0.03125, %v322_v2 }
  0xe8   : > { %v325_v4 = vsub.f32 %v1778_v0, %v324_v3 }
  0xea   : > { %v326_v5 = vmul.f32 %v325_v4, %v325_v4 }
  0xec   : > { %v327_v6 = vsel %vm319_vm0, %v326_v5, 0.0 }
  0xed   : > { %328 = vadd.xlane.f32.xlu0 %v327_v6 }
 0x17a   : > { %v329_v10 = vpop.xlane.xlu0 %328 }
 0x17b   : > { %v330_v11 = vmul.f32 0.03125, %v329_v10 }
 0x17d   : > { %v331_v13 = vadd.f32 1e-06, %v330_v11 }
 0x17f   : > { %1447 = vrsqrt.f32 %v331_v13 }
 0x189   : > { %v1448_v19 = vpop.eup %1447 }
 0x18a   : > { %v333_v20 = vmul.f32 %v1448_v19, %v325_v4 }
 0x18c   : > { %v338_v22 = vmul.f32 %v337_v18, %v333_v20 }
 0x18e   : > { %v343_v23 = vadd.f32 %v342_v21, %v338_v22 }
 0x190   : > { %v344_v24 = vpack.c.bf16 %v343_v23, %v343_v23 }
 0x192   : > { %1286 = vmatmul.mubr.msk.bf16.vlgmr.msra.gmra.mrb[0].mxu0 %vm319_vm0, %v344_v24 }
 0x193   : > { %1297 = vmatprep.mubr.msk.bf16.mxu0 %vm1600_vm1, %v1599_v8 }
 0x265   : > { %v402_v27 = vpop.f32.mrb[0].mxu0 }
 0x266   : > { %v403_v28 = vadd.f32 %v402_v27, %v352_v26  ;;  %v1287_v29 = vpop.f32.mrb[1].mxu0 }
 0x267   : > { %v405_v30 = vpop.f32.mrb[2].mxu0 }
 0x268   : > { %v1811_v31 = vpack.c.bf16 %v403_v28, %v403_v28  ;;  %v1288_v32 = vpop.f32.mrb[3].mxu0 }
 0x26a   : > { %414 = vrot.lane.b32.xlu0 %v1811_v31, %s1601_s29  ;;  %410 = vrot.lane.b32.xlu1 %v1811_v31, %s1602_s8  ;;  %s1937_s29 = scalar_lea.hbm %s1987_s7, %s1248_s19 }
 0x26e   : > { %412 = vrot.lane.b32.xlu1 %v1811_v31, %s1603_s9  ;;  %s1609_s9 = smov [#allocation7]  }
 0x272   : > { %424 = vrot.lane.b32.xlu1 %v1811_v31, %s1604_s15 }
 0x2dc   : > { %v1817_v33 = vpop.permute.xlu1 %410  ;;  %v1823_v35 = vpop.permute.xlu0 %414 }
 0x2dd   : > { %473 = vrot.lane.b32.xlu1 %v1817_v33, %s1604_s15 }
 0x2e0   : > { %v1820_v34 = vpop.permute.xlu1 %412 }
 0x2e1   : > { %521 = vrot.lane.b32.xlu1 %v1820_v34, %s1604_s15 }
 0x2e4   : > { %v425_v36 = vpop.permute.xlu1 %424 }
 0x2e5   : > { %569 = vrot.lane.b32.xlu1 %v1823_v35, %s1604_s15  ;;  %v431_v37 = vsel %vm426_vm2, %v425_v36, 0  ;;  %s1527_s15 = sshll.u32 %s1609_s9, 4  ;;  %s1528_s15 = int_to_ptr.vmem [resolvable:$false] %s1527_s15 }
 0x2e6   : > { %1290 = vmatpush3.bf16.xpose.msra.mxu1 %v431_v37  ;;  %s1529_s10 = scalar_lea.vmem %s1528_s15, 256 }
 0x2e7   : > { %1301 = vmatprep.subr.bf16.mxu1 %v1599_v8 }
 0x2ed   : > { %1292 = vmatmul.mubr.msk.bf16.vlgmr.msra.gmra.mrb[0].mxu1 %vm426_vm2, %v1811_v31 }
 0x2ee   : > { %1303 = vmatprep.mubr.msk.bf16.mxu1 %vm1600_vm1, %v1599_v8 }
 0x34f   : > { %v474_v38 = vpop.permute.xlu1 %473 }
 0x350   : > { %v479_v39 = vsel %vm426_vm2, %v474_v38, 0 }
 0x351   : > { %1296 = vmatpush3.bf16.xpose.msra.mxu0 %v479_v39 }
 0x352   : > { %1307 = vmatprep.subr.bf16.mxu0 %v1599_v8 }
 0x353   : > { %v522_v40 = vpop.permute.xlu1 %521 }
 0x354   : > { %v527_v41 = vsel %vm426_vm2, %v522_v40, 0 }
 0x355   : > { %1302 = vmatpush3.bf16.xpose.msra.mxu1 %v527_v41 }
 0x356   : > { %1313 = vmatprep.subr.bf16.mxu1 %v1599_v8 }
 0x357   : > { %v570_v42 = vpop.permute.xlu1 %569 }
 0x358   : > { %v575_v43 = vsel %vm426_vm2, %v570_v42, 0  ;;  %1298 = vmatmul.mubr.msk.bf16.vlgmr.msra.gmra.mrb[4].mxu0 %vm426_vm2, %v1817_v33 }
 0x359   : > { %1308 = vmatpush3.bf16.xpose.msra.mxu0 %v575_v43  ;;  %1309 = vmatprep.mubr.msk.bf16.mxu0 %vm1600_vm1, %v1599_v8 }
 0x35a   : > { %1319 = vmatprep.subr.bf16.mxu0 %v1599_v8 }
 0x35c   : > { %1304 = vmatmul.mubr.msk.bf16.vlgmr.msra.gmra.mrb[4].mxu1 %vm426_vm2, %v1820_v34 }
 0x35d   : > { %1315 = vmatprep.mubr.msk.bf16.mxu1 %vm1600_vm1, %v1599_v8 }
 0x360   : > { %1310 = vmatmul.mubr.msk.bf16.vlgmr.msra.gmra.mrb[8].mxu0 %vm426_vm2, %v1823_v35 }
 0x361   : > { %1321 = vmatprep.mubr.msk.bf16.mxu0 %vm1600_vm1, %v1599_v8 }
 0x3c0   : > { %v467_v47 = vpop.f32.mrb[0].mxu1 }
 0x3c1   : > { %v468_v48 = vadd.f32 %v467_v47, %v422_v46  ;;  %v1293_v49 = vpop.f32.mrb[1].mxu1 }
 0x3c2   : > { %v470_v50 = vpop.f32.mrb[2].mxu1 }
 0x3c3   : > { %v1294_v51 = vpop.f32.mrb[3].mxu1  ;;  %v617_v52 = vsel %vm426_vm2, %v468_v48, -inf }
 0x3c4   : > { %618 = vmax.xlane.f32.xlu1 %v617_v52 }
 0x42b   : > { %v515_v53 = vpop.f32.mrb[4].mxu0 }
 0x42c   : > { %v516_v54 = vadd.f32 %v515_v53, %v422_v46  ;;  %v1299_v55 = vpop.f32.mrb[5].mxu0 }
 0x42d   : > { %v518_v56 = vpop.f32.mrb[6].mxu0 }
 0x42e   : > { %v1300_v57 = vpop.f32.mrb[7].mxu0  ;;  %v620_v58 = vsel %vm426_vm2, %v516_v54, -inf }
 0x42f   : > { %v563_v59 = vpop.f32.mrb[4].mxu1  ;;  %621 = vmax.xlane.f32.xlu0 %v620_v58 }
 0x430   : > { %v564_v60 = vadd.f32 %v563_v59, %v422_v46  ;;  %v1305_v61 = vpop.f32.mrb[5].mxu1  ;;  %v1439_v59 = vld [vmem:[%s1983_s3] sm:$0xff]  }
 0x431   : > { %v566_v62 = vpop.f32.mrb[6].mxu1 }
 0x432   : > { %v1306_v63 = vpop.f32.mrb[7].mxu1  ;;  %v623_v1 = vsel %vm426_vm2, %v564_v60, -inf }
 0x433   : > { %624 = vmax.xlane.f32.xlu1 %v623_v1  ;;  %v611_v2 = vpop.f32.mrb[8].mxu0 }
 0x434   : > { %v612_v3 = vadd.f32 %v611_v2, %v422_v46  ;;  %v1311_v4 = vpop.f32.mrb[9].mxu0 }
 0x435   : > { %v614_v5 = vpop.f32.mrb[10].mxu0 }
 0x436   : > { %v1312_v6 = vpop.f32.mrb[11].mxu0  ;;  %v626_v7 = vsel %vm426_vm2, %v612_v3, -inf }
 0x437   : > { %627 = vmax.xlane.f32.xlu0 %v626_v7 }
 0x444   : > { %665 = vrot.lane.b32.xlu1 %v1811_v31, %s1605_s16 }
 0x451   : > { %v619_v9 = vpop.xlane.xlu1 %618 }
 0x452   : > { %v629_v10 = vsub.f32 %v468_v48, %v619_v9 }
 0x454   : > { %v633_v11 = vmul.f32 1.442695, %v629_v10 }
 0x456   : > { %1449 = vpow2.f32 %v633_v11 }
 0x460   : > { %v1450_v12 = vpop.eup %1449 }
 0x461   : > { %v641_v13 = vsel %vm426_vm2, %v1450_v12, 0.0 }
 0x468   : > { %642 = vadd.xlane.f32.xlu1 %v641_v13 }
 0x4bc   : > { %v622_v15 = vpop.xlane.xlu0 %621 }
 0x4bd   : > { %v630_v17 = vsub.f32 %v516_v54, %v622_v15 }
 0x4bf   : > { %v635_v18 = vmul.f32 1.442695, %v630_v17 }
 0x4c0   : > { %v625_v19 = vpop.xlane.xlu1 %624 }
 0x4c1   : > { %1451 = vpow2.f32 %v635_v18  ;;  %v631_v20 = vsub.f32 %v564_v60, %v625_v19  ;;  %v1440_v60 = vld [vmem:[%s1983_s3 + $0x8] sm:$0xff]  }
 0x4c3   : > { %v637_v21 = vmul.f32 1.442695, %v631_v20  ;;  %v882_v20 = vsub.s32 4, %v1798_v14 }
 0x4c4   : > { %v666_v22 = vpop.permute.xlu1 %665  ;;  %v628_v23 = vpop.xlane.xlu0 %627 }
 0x4c5   : > { %1453 = vpow2.f32 %v637_v21  ;;  %v672_v24 = vsel %vm670_vm3, %v666_v22, 0  ;;  %v632_v25 = vsub.f32 %v612_v3, %v628_v23  ;;  %v883_v21 = vrot.slane %v1801_v16, %v882_v20 }
 0x4c6   : > { %1314 = vmatpush3.bf16.msra.mxu1 %v672_v24 }
 0x4c7   : > { %v639_v26 = vmul.f32 1.442695, %v632_v25  ;;  %1325 = vmatprep.subr.bf16.mxu1 %v1599_v8 }
 0x4c9   : > { %1455 = vpow2.f32 %v639_v26 }
 0x4cb   : > { %v1452_v27 = vpop.eup %1451 }
 0x4cc   : > { %v644_v28 = vsel %vm426_vm2, %v1452_v27, 0.0 }
 0x4cd   : > { %645 = vadd.xlane.f32.xlu0 %v644_v28 }
 0x4cf   : > { %v1454_v29 = vpop.eup %1453 }
 0x4d0   : > { %v647_v30 = vsel %vm426_vm2, %v1454_v29, 0.0 }
 0x4d1   : > { %648 = vadd.xlane.f32.xlu1 %v647_v30 }
 0x4d3   : > { %v1456_v31 = vpop.eup %1455 }
 0x4d4   : > { %v650_v32 = vsel %vm426_vm2, %v1456_v31, 0.0 }
 0x4d5   : > { %651 = vadd.xlane.f32.xlu0 %v650_v32 }
 0x4e2   : > { %762 = vrot.lane.b32.xlu1 %v1820_v34, %s1605_s16 }
 0x4e6   : > { %810 = vrot.lane.b32.xlu1 %v1823_v35, %s1605_s16 }
 0x4eb   : > { %714 = vrot.lane.b32.xlu0 %v1817_v33, %s1605_s16 }
 0x4f5   : > { %v643_v36 = vpop.xlane.xlu1 %642 }
 0x4f6   : > { %1457 = vrcp.f32 %v643_v36 }
 0x500   : > { %v1458_v37 = vpop.eup %1457 }
 0x501   : > { %v657_v38 = vmul.f32 %v1458_v37, %v1450_v12  ;;  %v1441_v37 = vld [vmem:[#allocation2] sm:$0xff]  }
 0x503   : > { %v661_v39 = vpack.c.bf16 %v657_v38, %v657_v38  ;;  %v1442_v38 = vld [vmem:[#allocation2 + $0x8] sm:$0xff]  }
 0x505   : > { %1316 = vmatmul.mubr.msk.bf16.vlgmr.msra.gmra.mrb[8].mxu1 %vm426_vm2, %v661_v39  ;;  %v1444_v39 = vld [vmem:[%s1985_s5 + $0x8] sm:$0xff]  }
 0x506   : > { %1327 = vmatprep.mubr.msk.bf16.mxu1 %vm1600_vm1, %v1599_v8 }
 0x55a   : > { %v646_v40 = vpop.xlane.xlu0 %645 }
 0x55b   : > { %1459 = vrcp.f32 %v646_v40 }
 0x55e   : > { %v649_v41 = vpop.xlane.xlu1 %648 }
 0x55f   : > { %1461 = vrcp.f32 %v649_v41 }
 0x562   : > { %v763_v34 = vpop.permute.xlu1 %762  ;;  %v652_v42 = vpop.xlane.xlu0 %651 }
 0x563   : > { %v768_v35 = vsel %vm670_vm3, %v763_v34, 0  ;;  %1463 = vrcp.f32 %v652_v42  ;;  %v955_v42 = vsub.s32 2, %v1798_v14 }
 0x564   : > { %1326 = vmatpush3.bf16.msra.mxu1 %v768_v35  ;;  %v960_v35 = vsub.s32 3, %v1798_v14 }
 0x565   : > { %v1460_v33 = vpop.eup %1459  ;;  %1337 = vmatprep.subr.bf16.mxu1 %v1599_v8 }
 0x566   : > { %v658_v43 = vmul.f32 %v1460_v33, %v1452_v27  ;;  %v715_v44 = vpop.permute.xlu0 %714  ;;  %v811_v46 = vpop.permute.xlu1 %810  ;;  %v956_v33 = vrot.slane %v1801_v16, %v955_v42 }
 0x567   : > { %v720_v45 = vsel %vm670_vm3, %v715_v44, 0  ;;  %v816_v50 = vsel %vm670_vm3, %v811_v46, 0 }
 0x568   : > { %1320 = vmatpush3.bf16.msra.mxu0 %v720_v45  ;;  %v662_v47 = vpack.c.bf16 %v658_v43, %v658_v43  ;;  %v961_v45 = vrot.slane %v1801_v16, %v960_v35 }
 0x569   : > { %v1462_v48 = vpop.eup %1461  ;;  %1331 = vmatprep.subr.bf16.mxu0 %v1599_v8 }
 0x56a   : > { %v659_v49 = vmul.f32 %v1462_v48, %v1454_v29 }
 0x56b   : > { %1322 = vmatmul.mubr.msk.bf16.vlgmr.msra.gmra.mrb[12].mxu0 %vm426_vm2, %v662_v47 }
 0x56c   : > { %1332 = vmatpush3.bf16.msra.mxu0 %v816_v50  ;;  %v663_v51 = vpack.c.bf16 %v659_v49, %v659_v49  ;;  %1333 = vmatprep.mubr.msk.bf16.mxu0 %vm1600_vm1, %v1599_v8  ;;  %v1445_v49 = vld [vmem:[%s1985_s5 + $0x10] sm:$0xff]   ;;  %v1446_v50 = vld [vmem:[%s1985_s5 + $0x18] sm:$0xff]  }
 0x56d   : > { %v1464_v52 = vpop.eup %1463  ;;  %1345 = vmatprep.subr.bf16.mxu0 %v1599_v8 }
 0x56e   : > { %v660_v53 = vmul.f32 %v1464_v52, %v1456_v31  ;;  %1328 = vmatmul.mubr.msk.bf16.vlgmr.msra.gmra.mrb[12].mxu1 %vm426_vm2, %v663_v51  ;;  %v970_v51 = vsub.s32 7, %v1798_v14 }
 0x56f   : > { %1341 = vmatprep.mubr.msk.bf16.mxu1 %vm1600_vm1, %v1599_v8  ;;  %1338 = vmatpush3.bf16.msra.mxu1 %v1439_v59 }
 0x570   : > { %v664_v54 = vpack.c.bf16 %v660_v53, %v660_v53  ;;  %1339 = vmatprep.subr.bf16.mxu1 %v1599_v8  ;;  %v971_v52 = vrot.slane %v1801_v16, %v970_v51 }
 0x573   : > { %1334 = vmatmul.mubr.msk.bf16.vlgmr.msra.gmra.mrb[16].mxu0 %vm426_vm2, %v664_v54  ;;  %1340 = vmatpush3.bf16.msra.mxu1 %v1440_v60 }
 0x574   : > { %1349 = vmatprep.mubr.msk.bf16.mxu0 %vm1600_vm1, %v1599_v8  ;;  %1353 = vmatprep.subr.bf16.mxu1 %v1599_v8 }
 0x575   : > { %1346 = vmatpush3.bf16.msra.mxu0 %v1441_v37 }
 0x576   : > { %1347 = vmatprep.subr.bf16.mxu0 %v1599_v8 }
 0x579   : > { %1348 = vmatpush3.bf16.msra.mxu0 %v1442_v38 }
 0x5d8   : > { %v708_v55 = vpop.f32.mrb[8].mxu1 }
 0x5d9   : > { %v1317_v56 = vpop.f32.mrb[9].mxu1 }
 0x5da   : > { %v711_v57 = vpop.f32.mrb[10].mxu1 }
 0x5db   : > { %v1318_v58 = vpop.f32.mrb[11].mxu1 }
 0x63e   : > { %v756_v61 = vpop.f32.mrb[12].mxu0 }
 0x63f   : > { %859 = vrot.lane.b32.xlu0 %v756_v61, %s1606_s21  ;;  %v1323_v62 = vpop.f32.mrb[13].mxu0  ;;  %s1125_s21 = sshll.u32 %s308_s20, 4  ;;  %s1939_s21 = int_to_ptr.vmem [resolvable:$true] %s1125_s21 }
 0x640   : > { %v759_v63 = vpop.f32.mrb[14].mxu0  ;;  %s1523_s8 = scalar_lea.vmem %s1939_s21, 128  ;;  %p1530_p4 = scmp.lt.s32.totalorder %s1939_s21, %s1528_s15 }
 0x641   : > { %v1324_v1 = vpop.f32.mrb[15].mxu0  ;;  %v804_v2 = vpop.f32.mrb[12].mxu1  ;;  %p1524_p12 = scmp.ne.s32.totalorder %s1939_s21, %s1523_s8  ;;  %p1531_p7 = scmp.lt.s32.totalorder %s1529_s10, %s1523_s8 }
 0x642   : > { %863 = vrot.lane.b32.xlu1 %v804_v2, %s1607_s22  ;;  %v1329_v3 = vpop.f32.mrb[13].mxu1 }
 0x643   : > { %v807_v4 = vpop.f32.mrb[14].mxu1  ;;  %p1525_p2 = pnand %p1524_p12, %p2001_p1  ;;  %p1532_p8 = por %p1531_p7, %p1530_p4 }
 0x644   : > { %v1330_v5 = vpop.f32.mrb[15].mxu1 }
 0x645   : > { %p1526_p3 = pneg %p1525_p2 }
 0x646   : > { %v852_v6 = vpop.f32.mrb[16].mxu0 }
 0x647   : > { %867 = vrot.lane.b32.xlu0 %v852_v6, %s1608_s23  ;;  %v1335_v7 = vpop.f32.mrb[17].mxu0  ;;  %p1533_p11 = pnand %p1532_p8, %p1526_p3 }
 0x648   : > { %v855_v9 = vpop.f32.mrb[18].mxu0 }
 0x649   : > { %v1336_v10 = vpop.f32.mrb[19].mxu0 }
 0x6b1   : > { %v860_v11 = vpop.permute.xlu0 %859 }
 0x6b2   : > { %v870_v13 = vsel %vm426_vm2, %v708_v55, %v860_v11 }
 0x6b4   : > { %v864_v12 = vpop.permute.xlu1 %863 }
 0x6b5   : > { %v872_v15 = vsel %vm871_vm4, %v870_v13, %v864_v12 }
 0x6b9   : > { %v868_v17 = vpop.permute.xlu0 %867 }
 0x6ba   : > { %v874_v18 = vsel %vm873_vm5, %v872_v15, %v868_v17 }
 0x6bb   : > { %v875_v19 = vpack.c.bf16 %v874_v18, %v874_v18 }
 0x6bd   : > { %1342 = vmatmul.mubr.msk.bf16.vlgmr.msra.gmra.mrb[16].mxu1 %vm319_vm0, %v875_v19 }
 0x6be   : > { %1361 = vmatprep.mubr.msk.bf16.mxu1 %vm1600_vm1, %v1599_v8 }
 0x790   : > { %v933_v22 = vpop.f32.mrb[16].mxu1 }
 0x791   : > { %v934_v23 = vadd.f32 %v933_v22, %v883_v21  ;;  %v1343_v24 = vpop.f32.mrb[17].mxu1 }
 0x792   : > { %v936_v25 = vpop.f32.mrb[18].mxu1 }
 0x793   : > { %v939_v26 = vadd.f32 %v934_v23, %v1778_v0  ;;  %v1344_v27 = vpop.f32.mrb[19].mxu1  ;;  %v1443_v0 = vld [vmem:[%s1985_s5] sm:$0xff]  }
 0x794   : > { %1354 = vmatpush3.bf16.msra.mxu1 %v1443_v0 }
 0x795   : > { %v940_v28 = vsel %vm319_vm0, %v939_v26, 0.0  ;;  %1355 = vmatprep.subr.bf16.mxu1 %v1599_v8 }
 0x796   : > { %941 = vadd.xlane.f32.xlu1 %v940_v28 }
 0x798   : > { %1356 = vmatpush3.bf16.msra.mxu1 %v1444_v39 }
 0x799   : > { %1357 = vmatprep.subr.bf16.mxu1 %v1599_v8 }
 0x79c   : > { %1358 = vmatpush3.bf16.msra.mxu1 %v1445_v49 }
 0x79d   : > { %1359 = vmatprep.subr.bf16.mxu1 %v1599_v8  ;;  %v1039_v8 = vsub.s32 5, %v1798_v14 }
 0x79f   : > { %v1040_v60 = vrot.slane %v1801_v16, %v1039_v8 }
 0x7a0   : > { %1360 = vmatpush3.bf16.msra.mxu1 %v1446_v50 }
 0x823   : > { %v942_v29 = vpop.xlane.xlu1 %941 }
 0x824   : > { %v943_v30 = vmul.f32 0.03125, %v942_v29 }
 0x826   : > { %v944_v31 = vsub.f32 %v939_v26, %v943_v30 }
 0x828   : > { %v945_v32 = vmul.f32 %v944_v31, %v944_v31 }
 0x82a   : > { %v946_v36 = vsel %vm319_vm0, %v945_v32, 0.0 }
 0x82b   : > { %947 = vadd.xlane.f32.xlu0 %v946_v36 }
 0x8b8   : > { %v948_v40 = vpop.xlane.xlu0 %947 }
 0x8b9   : > { %v949_v41 = vmul.f32 0.03125, %v948_v40 }
 0x8bb   : > { %v950_v34 = vadd.f32 1e-06, %v949_v41 }
 0x8bd   : > { %1465 = vrsqrt.f32 %v950_v34 }
 0x8c7   : > { %v1466_v43 = vpop.eup %1465 }
 0x8c8   : > { %v952_v44 = vmul.f32 %v1466_v43, %v944_v31 }
 0x8ca   : > { %v957_v46 = vmul.f32 %v956_v33, %v952_v44 }
 0x8cc   : > { %v962_v47 = vadd.f32 %v961_v45, %v957_v46 }
 0x8ce   : > { %v963_v48 = vpack.c.bf16 %v962_v47, %v962_v47 }
 0x8d0   : > { %1350 = vmatmul.mubr.msk.bf16.vlgmr.msra.gmra.mrb[20].mxu0 %vm319_vm0, %v963_v48 }
 0x9a3   : > { %v1021_v53 = vpop.f32.mrb[20].mxu0 }
 0x9a4   : > { %v1022_v54 = vadd.f32 %v1021_v53, %v971_v52  ;;  %v1351_v55 = vpop.f32.mrb[21].mxu0 }
 0x9a5   : > { %v1024_v56 = vpop.f32.mrb[22].mxu0 }
 0x9a6   : > { %v1027_v57 = vmax.f32 %v1022_v54, 0.0  ;;  %v1352_v58 = vpop.f32.mrb[23].mxu0 }
 0x9a8   : > { %v1028_v59 = vpack.c.bf16 %v1027_v57, %v1027_v57 }
 0x9aa   : > { %1362 = vmatmul.mubr.msk.bf16.vlgmr.msra.gmra.mrb[20].mxu1 %vm1065_vm6, %v1028_v59 }
 0xa7d   : > { %v1103_v61 = vpop.f32.mrb[20].mxu1 }
 0xa7e   : > { %v1104_v62 = vadd.f32 %v1103_v61, %v1040_v60  ;;  %v1363_v63 = vpop.f32.mrb[21].mxu1 }
 0xa7f   : > { %v1106_v1 = vpop.f32.mrb[22].mxu1 }
 0xa80   : > { %v1109_v2 = vadd.f32 %v1104_v62, %v939_v26  ;;  %v1364_v3 = vpop.f32.mrb[23].mxu1 }
 0xa82   : > { %1110 = vst.msk [vmem:[%s308_s20] sm:$0xff] %vm319_vm0, %v1109_v2 }
 0xa83   : > { %1536 = shalt.err (!%p1533_p11)
}
 0xa84   : > { %s1537_s14 = scalar_lea.hbm %s1937_s29, 128  ;;  %s1541_s18 = scalar_lea.hbm %s1987_s7, 256 }
 0xa85   : > { %p1538_p13 = scmp.ne.s32.totalorder %s1937_s29, %s1537_s14  ;;  %p1542_p6 = scmp.lt.u32.totalorder %s1937_s29, %s1987_s7 }
 0xa86   : > { %p1543_p9 = scmp.lt.u32.totalorder %s1541_s18, %s1537_s14  ;;  %p1545_p12 = scmp.lt.u32.totalorder %s1537_s14, %s1937_s29 }
 0xa87   : > { %p1539_p5 = pnand %p1538_p13, %p2001_p1 }
 0xa88   : > { %p1544_p10 = por %p1543_p9, %p1542_p6 }
 0xa89   : > { %p1540_p0 = pneg %p1539_p5 }
 0xa8a   : > { %p1546_p2 = por %p1545_p12, %p1544_p10 }
 0xa8c   : > { %p1547_p3 = pnand %p1546_p2, %p1540_p0 }
 0xa8e   : > { %1550 = shalt.err (!%p1547_p3)
}
 0xa8f   : > { %1373 = dma.vmem_to_hbm [thread:$0]  (%p2001_p1), %s1939_s21, 128, %s1937_s29, %s1112_s28  }
 0xa90 PF: > { %p1390_p4 = scmp.ge.s32.totalorder %s1593_s27, 2  ;;  %s1137_s20 = sand.u32 1, %s1581_s24  }
 0xa91   : > { %p2002_p7 = scmp.ne.s32.totalorder %s1993_s12, 0  ;;  %s1138_s22 = scalar_lea.sflag [#allocation4], %s1137_s20 }
 0xa93   : > { %p1383_p8 = pnand %p1390_p4, %p2002_p7 }
 0xa95   : > { %1576 = dma.done.wait (!%p1383_p8), %s1138_s22, 128  }
 0xa96   : > { %1578 = vsyncadd (!%p1383_p8), %s1138_s22, 4294967168  ;;  %s2003_s23 = sld [smem:[#allocation11_spill]]  ;;  %p19_p11 = scmp.ge.s32.totalorder %s1675_s30, 4  }
 0xa97   : > { %s2004_s24 = smov %s1585_s25  ;;  %s2005_s25 = smov %s1589_s26 }
 0xa98   : > { %s2007_s27 = smov %s1675_s30  ;;  %21 = sbr.rel (!%p19_p11) target bundleno = 5 (0x5), region = 95 }
 0xa9c   : > { %s2006_s26 = smov %s2003_s23 }
 0xa9f   :  { %1143 = vsyncpa [#allocation3], 1 }
 0xaa0   :  { %1145 = vsyncpa [#allocation3 + $0x1], 1 }
 0xaa1   :  { %1146 = vsyncpa [#allocation6], 1 }
 0xaa2   :  { %1147 = vsyncpa [#allocation4], 1 }
 0xaa3   :  { %1149 = vsyncpa [#allocation4 + $0x1], 1 }

</bundles_post_ra>
